<compile_context>
chip_gen: v6e
topology: v6e:2x2x1
jax: 0.10.0
libtpu: 0.0.40
codegen_flags: <defaults>
</compile_context>

<pallas_src>
import math
from functools import partial, lru_cache

import numpy as np
import jax
import jax.numpy as jnp
from jax.experimental import pallas as pl
from jax.experimental.pallas import tpu as pltpu

_LN_EPS = 1e-6


def _round_up(x, m):
    return (x + m - 1) // m * m


@lru_cache(maxsize=None)
def _vmem_capacity_bytes():
    try:
        return int(pltpu.get_tpu_info().vmem_capacity_bytes)
    except Exception:
        return 128 * 1024 * 1024


def _default_tm_max():
    # v7x: 64 MiB VMEM / TC -> smaller P tiles; v5e/v6e (128 MiB) can afford bigger tiles.
    return 512 if _vmem_capacity_bytes() <= 64 * 1024 * 1024 else 1024


# ----------------------------- in-kernel math helpers -----------------------------
def _erf_f32(x, approx_recip):
    # lax.erf has no guaranteed Mosaic lowering; Abramowitz & Stegun 7.1.26 (max abs err ~1.5e-7).
    # exp (and the reciprocal when approx) run on the EUP slot, off the VALU.
    a1, a2, a3, a4, a5 = (0.254829592, -0.284496736, 1.421413741,
                          -1.453152027, 1.061405429)
    p = 0.3275911
    sgn = jnp.where(x >= 0.0, 1.0, -1.0)
    z = jnp.abs(x)
    t = pl.reciprocal(1.0 + p * z, approx=approx_recip)
    poly = ((((a5 * t + a4) * t + a3) * t + a2) * t + a1) * t
    return sgn * (1.0 - poly * jnp.exp(-z * z))


def _gelu_exact(x, approx_recip):
    # nn.GELU() default (erf form): 0.5 * x * (1 + erf(x / sqrt(2)))
    return 0.5 * x * (1.0 + _erf_f32(x * (1.0 / math.sqrt(2.0)), approx_recip))


# ----------------------------- Pallas kernel -----------------------------
def _make_kernel(c_true, fuse_head, approx_recip):
    """Fused: single-K-tile im2col matmul + bias + channels_first LayerNorm + exact GELU
    (+ optionally the 1x1 head matmul). fp32 accumulation stays in vregs (no VMEM scratch)."""
    inv_c = 1.0 / float(c_true)

    def kernel(*refs):
        if fuse_head:
            p_ref, w_ref, b_ref, g_ref, bt_ref, w2_ref, b2_ref, o_ref = refs
        else:
            p_ref, w_ref, b_ref, g_ref, bt_ref, o_ref = refs

        # One MXU matmul per P tile; K is a single tile so no accumulator round trip.
        y = jnp.dot(p_ref[...], w_ref[...], preferred_element_type=jnp.float32)
        y = y + b_ref[...]

        # PyTorch LayerNorm(channels_first): per-pixel mean / biased variance over channels.
        # Variance via E[y^2] - mean^2: one extra lane-reduction instead of iota/select masking.
        u = jnp.sum(y, axis=-1, keepdims=True) * inv_c
        ss = jnp.sum(y * y, axis=-1, keepdims=True) * inv_c
        var = jnp.maximum(ss - u * u, 0.0)     # clamp: fp cancellation can dip slightly negative
        y = (y - u) * jax.lax.rsqrt(var + _LN_EPS)
        y = y * g_ref[...] + bt_ref[...]
        y = _gelu_exact(y, approx_recip)       # fp32 elementwise epilogue (VPU/EUP)

        if fuse_head:
            y = jnp.dot(y.astype(w2_ref.dtype), w2_ref[...],
                        preferred_element_type=jnp.float32) + b2_ref[...]
        o_ref[...] = y.astype(o_ref.dtype)

    return kernel


# ----------------------------- fused layer call -----------------------------
def _fused_conv_layer(patches, w_mat, bias, gamma, beta, *,
                      out_dtype, compute_dtype,
                      head_w=None, head_b=None, tm_max=None):
    """patches: (P, K), w_mat: (K, Cout). Returns (P, Cout) or (P, 512) if the head is fused."""
    P, K = patches.shape
    Cout = w_mat.shape[1]
    fuse_head = head_w is not None
    n_out = head_w.shape[1] if fuse_head else Cout

    if tm_max is None:
        tm_max = _default_tm_max()

    # P tiling: no padding; last (ragged) block, if any, is masked on store by Pallas.
    if P <= tm_max:
        tm = P
        # v7x has 2 TensorCores per chip: split into >=2 parallel P blocks when there's enough work.
        if _vmem_capacity_bytes() <= 64 * 1024 * 1024 and P >= 256:
            tm = _round_up(pl.cdiv(P, 2), 8)
    else:
        tm = tm_max
    grid_p = pl.cdiv(P, tm)

    patches = patches.astype(compute_dtype)
    w = w_mat.astype(compute_dtype)
    b = bias.reshape(1, Cout).astype(jnp.float32)
    g = gamma.reshape(1, Cout).astype(jnp.float32)
    bt = beta.reshape(1, Cout).astype(jnp.float32)

    in_specs = [
        pl.BlockSpec((tm, K), lambda i: (i, 0)),        # patches stream (tm, K) tiles
        pl.BlockSpec((K, Cout), lambda i: (0, 0)),      # full weight slab, DMA'd once (constant index)
        pl.BlockSpec((1, Cout), lambda i: (0, 0)),      # bias
        pl.BlockSpec((1, Cout), lambda i: (0, 0)),      # LN gamma
        pl.BlockSpec((1, Cout), lambda i: (0, 0)),      # LN beta
    ]
    args = [patches, w, b, g, bt]
    if fuse_head:
        w2 = head_w.astype(compute_dtype)
        b2 = head_b.reshape(1, n_out).astype(jnp.float32)
        in_specs += [pl.BlockSpec((Cout, n_out), lambda i: (0, 0)),
                     pl.BlockSpec((1, n_out), lambda i: (0, 0))]
        args += [w2, b2]

    approx_recip = jnp.dtype(compute_dtype) == jnp.dtype(jnp.bfloat16)

    # Cost estimate (advisory): weight fetched once; head weights/bytes included.
    in_isz = jnp.dtype(compute_dtype).itemsize
    out_isz = jnp.dtype(out_dtype).itemsize
    flops = 2 * P * K * Cout + (2 * P * Cout * n_out if fuse_head else 0)
    bytes_accessed = (P * K * in_isz + K * Cout * in_isz + P * n_out * out_isz
                      + 3 * Cout * 4
                      + (Cout * n_out * in_isz + n_out * 4 if fuse_head else 0))
    cost = pl.CostEstimate(flops=int(flops), transcendentals=int(3 * P * Cout),
                           bytes_accessed=int(bytes_accessed))

    # VMEM limit derived from the actual (double-buffered) block working set + fp32 epilogue temps.
    est = (2 * tm * K * in_isz + 2 * K * Cout * in_isz + 2 * tm * n_out * out_isz
           + 4 * tm * max(Cout, n_out) * 4
           + (2 * Cout * n_out * in_isz + 2 * n_out * 4 if fuse_head else 0))
    vmem_limit = int(min(max(2 * est, 16 * 1024 * 1024), 32 * 1024 * 1024))

    out = pl.pallas_call(
        _make_kernel(Cout, fuse_head, approx_recip),
        out_shape=jax.ShapeDtypeStruct((P, n_out), out_dtype),
        grid_spec=pltpu.PrefetchScalarGridSpec(
            num_scalar_prefetch=0,
            grid=(grid_p,),
            in_specs=in_specs,
            out_specs=pl.BlockSpec((tm, n_out), lambda i: (i, 0)),
        ),
        compiler_params=pltpu.CompilerParams(
            dimension_semantics=("parallel",),
            vmem_limit_bytes=vmem_limit),
        cost_estimate=cost,
    )(*args)
    return out


# ----------------------------- glue (reshapes / patch extraction) -----------------------------
def _im2col_3x3_s2_p1(x):
    """x: (N, H, W, C) -> (N*OH*OW, 9*C) patches for a 3x3, stride-2, pad-1 conv."""
    # TODO(synk): the 9x tap blowup is still materialized in HBM by XLA; streaming the taps with
    # manual halo DMA (memory_space=pl.ANY) inside the kernel would cut HBM traffic further on
    # the large early layers.
    N, H, W, C = x.shape
    OH = (H + 2 - 3) // 2 + 1
    OW = (W + 2 - 3) // 2 + 1
    xp = jnp.pad(x, ((0, 0), (1, 1), (1, 1), (0, 0)))
    cols = []
    for kh in range(3):
        for kw in range(3):
            cols.append(xp[:, kh:kh + 2 * OH:2, kw:kw + 2 * OW:2, :])
    patches = jnp.concatenate(cols, axis=-1)            # (N, OH, OW, 9*C), order (kh, kw, cin)
    return patches.reshape(N * OH * OW, 9 * C), (N, OH, OW)


def init_params(key, siz=8):
    """Deterministic parameter init (shapes follow ConvBlock2.__init__; fin_dim unused by forward)."""
    chans = [3, siz, siz * 2, siz * 4, siz * 8]
    params = {}
    for li in range(4):
        cin, cout = chans[li], chans[li + 1]
        key, k_w, k_b = jax.random.split(key, 3)
        w = jax.random.normal(k_w, (3, 3, cin, cout), dtype=jnp.float32) / math.sqrt(9 * cin)
        b = jax.random.normal(k_b, (cout,), dtype=jnp.float32) * 0.01
        gamma = jnp.ones((cout,), jnp.float32)   # LayerNorm defaults: weight=1, bias=0
        beta = jnp.zeros((cout,), jnp.float32)
        params[f"conv{li}"] = (w, b, gamma, beta)
    cin, cout = chans[4], 512                    # final 1x1 conv always maps to 512 channels
    key, k_w, k_b = jax.random.split(key, 3)
    w = jax.random.normal(k_w, (1, 1, cin, cout), dtype=jnp.float32) / math.sqrt(cin)
    b = jax.random.normal(k_b, (cout,), dtype=jnp.float32) * 0.01
    params["head"] = (w, b)
    return params


def conv_block2_forward(x_nchw, params, compute_dtype=jnp.bfloat16):
    """Forward of ConvBlock2. Input/output are NCHW (PyTorch convention)."""
    x = jnp.transpose(x_nchw, (0, 2, 3, 1)).astype(compute_dtype)     # -> NHWC
    head_w, head_b = params["head"]
    head_w_mat = head_w.reshape(head_w.shape[2], head_w.shape[3])     # (8*siz, 512)
    for li in range(4):
        w, b, g, bt = params[f"conv{li}"]
        cin, cout = w.shape[2], w.shape[3]
        patches, (N, OH, OW) = _im2col_3x3_s2_p1(x)
        w_mat = w.reshape(9 * cin, cout)                              # (kh, kw, cin) matches im2col
        last = (li == 3)
        y = _fused_conv_layer(
            patches, w_mat, b, g, bt,
            out_dtype=jnp.float32 if last else compute_dtype,
            compute_dtype=compute_dtype,
            head_w=head_w_mat if last else None,                      # fuse Conv1x1 head into layer 3
            head_b=head_b if last else None)
        x = y.reshape(N, OH, OW, y.shape[1])
    return jnp.transpose(x, (0, 3, 1, 2))                             # back to NCHW


# ----------------------------- pure-JAX reference (for correctness check) -----------------------------
def reference_forward(x_nchw, params, compute_dtype=jnp.bfloat16):
    x = jnp.transpose(x_nchw, (0, 2, 3, 1)).astype(jnp.float32)
    for li in range(4):
        w, b, g, bt = params[f"conv{li}"]
        y = jax.lax.conv_general_dilated(
            x.astype(compute_dtype), w.astype(compute_dtype),
            window_strides=(2, 2), padding=((1, 1), (1, 1)),
            dimension_numbers=("NHWC", "HWIO", "NHWC"),
            preferred_element_type=jnp.float32) + b
        u = jnp.mean(y, axis=-1, keepdims=True)
        s = jnp.mean((y - u) ** 2, axis=-1, keepdims=True)
        y = (y - u) / jnp.sqrt(s + _LN_EPS)
        y = y * g + bt
        x = jax.nn.gelu(y, approximate=False)
    w, b = params["head"]
    y = jax.lax.conv_general_dilated(
        x.astype(compute_dtype), w.astype(compute_dtype),
        window_strides=(1, 1), padding=((0, 0), (0, 0)),
        dimension_numbers=("NHWC", "HWIO", "NHWC"),
        preferred_element_type=jnp.float32) + b
    return jnp.transpose(y, (0, 3, 1, 2))


if __name__ == "__main__":
    key = jax.random.PRNGKey(0)
    siz = 8  # small stem width for the test (module default 48); channels: 3->8->16->32->64->512
    params = init_params(key, siz=siz)
    x = jax.random.normal(jax.random.fold_in(key, 99), (2, 3, 16, 16), dtype=jnp.float32)

    # strict numerical check (fp32 MXU path, exact reciprocal in erf)
    fwd_f32 = jax.jit(partial(conv_block2_forward, compute_dtype=jnp.float32))
    ref_f32 = jax.jit(partial(reference_forward, compute_dtype=jnp.float32))
    out32 = jax.block_until_ready(fwd_f32(x, params))
    assert out32.shape == (2, 512, 1, 1), out32.shape
    np.testing.assert_allclose(np.asarray(out32),
                               np.asarray(jax.block_until_ready(ref_f32(x, params))),
                               rtol=2e-2, atol=2e-2)

    # perf path: bf16 MXU inputs + bf16 intermediates (fp32 accumulation / LN / GELU)
    fwd_bf16 = jax.jit(partial(conv_block2_forward, compute_dtype=jnp.bfloat16))
    ref_bf16 = jax.jit(partial(reference_forward, compute_dtype=jnp.bfloat16))
    out16 = jax.block_until_ready(fwd_bf16(x, params))
    assert out16.shape == (2, 512, 1, 1), out16.shape
    np.testing.assert_allclose(np.asarray(out16),
                               np.asarray(jax.block_until_ready(ref_bf16(x, params))),
                               rtol=5e-2, atol=5e-2)

    print("KERNEL_OK")
</pallas_src>

<mosaic_0001>
module attributes {stable_mosaic.version = 11 : i64} {
  func.func @kernel(%arg0: i32, %arg1: memref<128x27xf32, #tpu.memory_space<vmem>>, %arg2: memref<27x8xf32, #tpu.memory_space<vmem>>, %arg3: memref<1x8xf32, #tpu.memory_space<vmem>>, %arg4: memref<1x8xf32, #tpu.memory_space<vmem>>, %arg5: memref<1x8xf32, #tpu.memory_space<vmem>>, %arg6: memref<128x8xf32, #tpu.memory_space<vmem>>) attributes {dimension_semantics = [#tpu.dimension_semantics<parallel>], iteration_bounds = array<i64: 1>, scalar_prefetch = 0 : i64, scratch_operands = 0 : i64, tpu.core_type = #tpu.core_type<tc>, window_params = [{transform_indices = @transform_0, window_bounds = array<i64: 128, 27>}, {pipeline_mode = #tpu.pipeline_mode<synchronous>, transform_indices = @transform_1, window_bounds = array<i64: 27, 8>}, {pipeline_mode = #tpu.pipeline_mode<synchronous>, transform_indices = @transform_2, window_bounds = array<i64: 1, 8>}, {pipeline_mode = #tpu.pipeline_mode<synchronous>, transform_indices = @transform_3, window_bounds = array<i64: 1, 8>}, {pipeline_mode = #tpu.pipeline_mode<synchronous>, transform_indices = @transform_4, window_bounds = array<i64: 1, 8>}, {transform_indices = @transform_5, window_bounds = array<i64: 128, 8>}]} {
    %c0 = arith.constant 0 : index
    %c0_0 = arith.constant 0 : index
    %0 = vector.load %arg1[%c0, %c0_0] : memref<128x27xf32, #tpu.memory_space<vmem>>, vector<128x27xf32>
    %c0_1 = arith.constant 0 : index
    %c0_2 = arith.constant 0 : index
    %1 = vector.load %arg2[%c0_1, %c0_2] : memref<27x8xf32, #tpu.memory_space<vmem>>, vector<27x8xf32>
    %cst = arith.constant dense<0.000000e+00> : vector<128x8xf32>
    %2 = tpu.matmul %0, %1, %cst {dimension_numbers = #tpu.dot_dimension_numbers<[1], [0], [0], [1], [0, 0, 1, 1], [], []>} : vector<128x27xf32>, vector<27x8xf32>, vector<128x8xf32> -> vector<128x8xf32>
    %c0_3 = arith.constant 0 : index
    %c0_4 = arith.constant 0 : index
    %3 = vector.load %arg3[%c0_3, %c0_4] : memref<1x8xf32, #tpu.memory_space<vmem>>, vector<1x8xf32>
    %4 = vector.broadcast %3 : vector<1x8xf32> to vector<128x8xf32>
    %5 = arith.addf %2, %4 : vector<128x8xf32>
    %cst_5 = arith.constant dense<0.000000e+00> : vector<128xf32>
    %6 = vector.multi_reduction <add>, %5, %cst_5 [1] : vector<128x8xf32> to vector<128xf32>
    %7 = vector.shape_cast %6 : vector<128xf32> to vector<128x1xf32>
    %cst_6 = arith.constant 1.250000e-01 : f32
    %8 = vector.broadcast %cst_6 : f32 to vector<128x1xf32>
    %9 = arith.mulf %7, %8 : vector<128x1xf32>
    %10 = arith.mulf %5, %5 : vector<128x8xf32>
    %cst_7 = arith.constant dense<0.000000e+00> : vector<128xf32>
    %11 = vector.multi_reduction <add>, %10, %cst_7 [1] : vector<128x8xf32> to vector<128xf32>
    %12 = vector.shape_cast %11 : vector<128xf32> to vector<128x1xf32>
    %cst_8 = arith.constant 1.250000e-01 : f32
    %13 = vector.broadcast %cst_8 : f32 to vector<128x1xf32>
    %14 = arith.mulf %12, %13 : vector<128x1xf32>
    %15 = arith.mulf %9, %9 : vector<128x1xf32>
    %16 = arith.subf %14, %15 : vector<128x1xf32>
    %cst_9 = arith.constant 0.000000e+00 : f32
    %17 = vector.broadcast %cst_9 : f32 to vector<128x1xf32>
    %18 = arith.maximumf %16, %17 : vector<128x1xf32>
    %19 = vector.broadcast %9 : vector<128x1xf32> to vector<128x8xf32>
    %20 = arith.subf %5, %19 : vector<128x8xf32>
    %cst_10 = arith.constant 9.99999997E-7 : f32
    %21 = vector.broadcast %cst_10 : f32 to vector<128x1xf32>
    %22 = arith.addf %18, %21 : vector<128x1xf32>
    %23 = math.rsqrt %22 : vector<128x1xf32>
    %24 = vector.broadcast %23 : vector<128x1xf32> to vector<128x8xf32>
    %25 = arith.mulf %20, %24 : vector<128x8xf32>
    %c0_11 = arith.constant 0 : index
    %c0_12 = arith.constant 0 : index
    %26 = vector.load %arg4[%c0_11, %c0_12] : memref<1x8xf32, #tpu.memory_space<vmem>>, vector<1x8xf32>
    %27 = vector.broadcast %26 : vector<1x8xf32> to vector<128x8xf32>
    %28 = arith.mulf %25, %27 : vector<128x8xf32>
    %c0_13 = arith.constant 0 : index
    %c0_14 = arith.constant 0 : index
    %29 = vector.load %arg5[%c0_13, %c0_14] : memref<1x8xf32, #tpu.memory_space<vmem>>, vector<1x8xf32>
    %30 = vector.broadcast %29 : vector<1x8xf32> to vector<128x8xf32>
    %31 = arith.addf %28, %30 : vector<128x8xf32>
    %cst_15 = arith.constant 5.000000e-01 : f32
    %32 = vector.broadcast %cst_15 : f32 to vector<128x8xf32>
    %33 = arith.mulf %32, %31 : vector<128x8xf32>
    %cst_16 = arith.constant 0.707106769 : f32
    %34 = vector.broadcast %cst_16 : f32 to vector<128x8xf32>
    %35 = arith.mulf %31, %34 : vector<128x8xf32>
    %cst_17 = arith.constant 0.000000e+00 : f32
    %36 = vector.broadcast %cst_17 : f32 to vector<128x8xf32>
    %37 = arith.cmpf oge, %35, %36 : vector<128x8xf32>
    %cst_18 = arith.constant 1.000000e+00 : f32
    %cst_19 = arith.constant -1.000000e+00 : f32
    %38 = vector.broadcast %cst_18 : f32 to vector<128x8xf32>
    %39 = vector.broadcast %cst_19 : f32 to vector<128x8xf32>
    %40 = arith.select %37, %38, %39 : vector<128x8xi1>, vector<128x8xf32>
    %41 = math.absf %35 : vector<128x8xf32>
    %cst_20 = arith.constant 0.327591091 : f32
    %42 = vector.broadcast %cst_20 : f32 to vector<128x8xf32>
    %43 = arith.mulf %42, %41 : vector<128x8xf32>
    %cst_21 = arith.constant 1.000000e+00 : f32
    %44 = vector.broadcast %cst_21 : f32 to vector<128x8xf32>
    %45 = arith.addf %44, %43 : vector<128x8xf32>
    %46 = tpu.reciprocal %45 : vector<128x8xf32> -> vector<128x8xf32>
    %cst_22 = arith.constant 1.06140542 : f32
    %47 = vector.broadcast %cst_22 : f32 to vector<128x8xf32>
    %48 = arith.mulf %47, %46 : vector<128x8xf32>
    %cst_23 = arith.constant -1.45315206 : f32
    %49 = vector.broadcast %cst_23 : f32 to vector<128x8xf32>
    %50 = arith.addf %48, %49 : vector<128x8xf32>
    %51 = arith.mulf %50, %46 : vector<128x8xf32>
    %cst_24 = arith.constant 1.42141378 : f32
    %52 = vector.broadcast %cst_24 : f32 to vector<128x8xf32>
    %53 = arith.addf %51, %52 : vector<128x8xf32>
    %54 = arith.mulf %53, %46 : vector<128x8xf32>
    %cst_25 = arith.constant -0.284496725 : f32
    %55 = vector.broadcast %cst_25 : f32 to vector<128x8xf32>
    %56 = arith.addf %54, %55 : vector<128x8xf32>
    %57 = arith.mulf %56, %46 : vector<128x8xf32>
    %cst_26 = arith.constant 0.254829586 : f32
    %58 = vector.broadcast %cst_26 : f32 to vector<128x8xf32>
    %59 = arith.addf %57, %58 : vector<128x8xf32>
    %60 = arith.mulf %59, %46 : vector<128x8xf32>
    %cst_27 = arith.constant 0.000000e+00 : f32
    %61 = vector.broadcast %cst_27 : f32 to vector<128x8xf32>
    %62 = arith.subf %61, %41 : vector<128x8xf32>
    %63 = arith.mulf %62, %41 : vector<128x8xf32>
    %64 = math.exp %63 : vector<128x8xf32>
    %65 = arith.mulf %60, %64 : vector<128x8xf32>
    %cst_28 = arith.constant 1.000000e+00 : f32
    %66 = vector.broadcast %cst_28 : f32 to vector<128x8xf32>
    %67 = arith.subf %66, %65 : vector<128x8xf32>
    %68 = arith.mulf %40, %67 : vector<128x8xf32>
    %cst_29 = arith.constant 1.000000e+00 : f32
    %69 = vector.broadcast %cst_29 : f32 to vector<128x8xf32>
    %70 = arith.addf %69, %68 : vector<128x8xf32>
    %71 = arith.mulf %33, %70 : vector<128x8xf32>
    %c0_30 = arith.constant 0 : index
    %c0_31 = arith.constant 0 : index
    %72 = vector.load %arg6[%c0_30, %c0_31] : memref<128x8xf32, #tpu.memory_space<vmem>>, vector<128x8xf32>
    tpu.vector_store %arg6[%c0_30, %c0_31], %71 {strides = array<i32>} : memref<128x8xf32, #tpu.memory_space<vmem>>, vector<128x8xf32>,
    return
  }
  func.func @transform_0(%arg0: i32) -> (i32, i32) {
    %c0_i32 = arith.constant 0 : i32
    %c0_i32_0 = arith.constant 0 : i32
    return %arg0, %c0_i32 : i32, i32
  }
  func.func @transform_1(%arg0: i32) -> (i32, i32) {
    %c0_i32 = arith.constant 0 : i32
    %c0_i32_0 = arith.constant 0 : i32
    %c0_i32_1 = arith.constant 0 : i32
    return %c0_i32, %c0_i32_0 : i32, i32
  }
  func.func @transform_2(%arg0: i32) -> (i32, i32) {
    %c0_i32 = arith.constant 0 : i32
    %c0_i32_0 = arith.constant 0 : i32
    %c0_i32_1 = arith.constant 0 : i32
    return %c0_i32, %c0_i32_0 : i32, i32
  }
  func.func @transform_3(%arg0: i32) -> (i32, i32) {
    %c0_i32 = arith.constant 0 : i32
    %c0_i32_0 = arith.constant 0 : i32
    %c0_i32_1 = arith.constant 0 : i32
    return %c0_i32, %c0_i32_0 : i32, i32
  }
  func.func @transform_4(%arg0: i32) -> (i32, i32) {
    %c0_i32 = arith.constant 0 : i32
    %c0_i32_0 = arith.constant 0 : i32
    %c0_i32_1 = arith.constant 0 : i32
    return %c0_i32, %c0_i32_0 : i32, i32
  }
  func.func @transform_5(%arg0: i32) -> (i32, i32) {
    %c0_i32 = arith.constant 0 : i32
    %c0_i32_0 = arith.constant 0 : i32
    return %arg0, %c0_i32 : i32, i32
  }
}

module attributes {stable_mosaic.version = 11 : i64} {
  func.func @kernel(%arg0: i32, %arg1: memref<32x72xf32, #tpu.memory_space<vmem>>, %arg2: memref<72x16xf32, #tpu.memory_space<vmem>>, %arg3: memref<1x16xf32, #tpu.memory_space<vmem>>, %arg4: memref<1x16xf32, #tpu.memory_space<vmem>>, %arg5: memref<1x16xf32, #tpu.memory_space<vmem>>, %arg6: memref<32x16xf32, #tpu.memory_space<vmem>>) attributes {dimension_semantics = [#tpu.dimension_semantics<parallel>], iteration_bounds = array<i64: 1>, scalar_prefetch = 0 : i64, scratch_operands = 0 : i64, tpu.core_type = #tpu.core_type<tc>, window_params = [{transform_indices = @transform_0, window_bounds = array<i64: 32, 72>}, {pipeline_mode = #tpu.pipeline_mode<synchronous>, transform_indices = @transform_1, window_bounds = array<i64: 72, 16>}, {pipeline_mode = #tpu.pipeline_mode<synchronous>, transform_indices = @transform_2, window_bounds = array<i64: 1, 16>}, {pipeline_mode = #tpu.pipeline_mode<synchronous>, transform_indices = @transform_3, window_bounds = array<i64: 1, 16>}, {pipeline_mode = #tpu.pipeline_mode<synchronous>, transform_indices = @transform_4, window_bounds = array<i64: 1, 16>}, {transform_indices = @transform_5, window_bounds = array<i64: 32, 16>}]} {
    %c0 = arith.constant 0 : index
    %c0_0 = arith.constant 0 : index
    %0 = vector.load %arg1[%c0, %c0_0] : memref<32x72xf32, #tpu.memory_space<vmem>>, vector<32x72xf32>
    %c0_1 = arith.constant 0 : index
    %c0_2 = arith.constant 0 : index
    %1 = vector.load %arg2[%c0_1, %c0_2] : memref<72x16xf32, #tpu.memory_space<vmem>>, vector<72x16xf32>
    %cst = arith.constant dense<0.000000e+00> : vector<32x16xf32>
    %2 = tpu.matmul %0, %1, %cst {dimension_numbers = #tpu.dot_dimension_numbers<[1], [0], [0], [1], [0, 0, 1, 1], [], []>} : vector<32x72xf32>, vector<72x16xf32>, vector<32x16xf32> -> vector<32x16xf32>
    %c0_3 = arith.constant 0 : index
    %c0_4 = arith.constant 0 : index
    %3 = vector.load %arg3[%c0_3, %c0_4] : memref<1x16xf32, #tpu.memory_space<vmem>>, vector<1x16xf32>
    %4 = vector.broadcast %3 : vector<1x16xf32> to vector<32x16xf32>
    %5 = arith.addf %2, %4 : vector<32x16xf32>
    %cst_5 = arith.constant dense<0.000000e+00> : vector<32xf32>
    %6 = vector.multi_reduction <add>, %5, %cst_5 [1] : vector<32x16xf32> to vector<32xf32>
    %7 = vector.shape_cast %6 : vector<32xf32> to vector<32x1xf32>
    %cst_6 = arith.constant 6.250000e-02 : f32
    %8 = vector.broadcast %cst_6 : f32 to vector<32x1xf32>
    %9 = arith.mulf %7, %8 : vector<32x1xf32>
    %10 = arith.mulf %5, %5 : vector<32x16xf32>
    %cst_7 = arith.constant dense<0.000000e+00> : vector<32xf32>
    %11 = vector.multi_reduction <add>, %10, %cst_7 [1] : vector<32x16xf32> to vector<32xf32>
    %12 = vector.shape_cast %11 : vector<32xf32> to vector<32x1xf32>
    %cst_8 = arith.constant 6.250000e-02 : f32
    %13 = vector.broadcast %cst_8 : f32 to vector<32x1xf32>
    %14 = arith.mulf %12, %13 : vector<32x1xf32>
    %15 = arith.mulf %9, %9 : vector<32x1xf32>
    %16 = arith.subf %14, %15 : vector<32x1xf32>
    %cst_9 = arith.constant 0.000000e+00 : f32
    %17 = vector.broadcast %cst_9 : f32 to vector<32x1xf32>
    %18 = arith.maximumf %16, %17 : vector<32x1xf32>
    %19 = vector.broadcast %9 : vector<32x1xf32> to vector<32x16xf32>
    %20 = arith.subf %5, %19 : vector<32x16xf32>
    %cst_10 = arith.constant 9.99999997E-7 : f32
    %21 = vector.broadcast %cst_10 : f32 to vector<32x1xf32>
    %22 = arith.addf %18, %21 : vector<32x1xf32>
    %23 = math.rsqrt %22 : vector<32x1xf32>
    %24 = vector.broadcast %23 : vector<32x1xf32> to vector<32x16xf32>
    %25 = arith.mulf %20, %24 : vector<32x16xf32>
    %c0_11 = arith.constant 0 : index
    %c0_12 = arith.constant 0 : index
    %26 = vector.load %arg4[%c0_11, %c0_12] : memref<1x16xf32, #tpu.memory_space<vmem>>, vector<1x16xf32>
    %27 = vector.broadcast %26 : vector<1x16xf32> to vector<32x16xf32>
    %28 = arith.mulf %25, %27 : vector<32x16xf32>
    %c0_13 = arith.constant 0 : index
    %c0_14 = arith.constant 0 : index
    %29 = vector.load %arg5[%c0_13, %c0_14] : memref<1x16xf32, #tpu.memory_space<vmem>>, vector<1x16xf32>
    %30 = vector.broadcast %29 : vector<1x16xf32> to vector<32x16xf32>
    %31 = arith.addf %28, %30 : vector<32x16xf32>
    %cst_15 = arith.constant 5.000000e-01 : f32
    %32 = vector.broadcast %cst_15 : f32 to vector<32x16xf32>
    %33 = arith.mulf %32, %31 : vector<32x16xf32>
    %cst_16 = arith.constant 0.707106769 : f32
    %34 = vector.broadcast %cst_16 : f32 to vector<32x16xf32>
    %35 = arith.mulf %31, %34 : vector<32x16xf32>
    %cst_17 = arith.constant 0.000000e+00 : f32
    %36 = vector.broadcast %cst_17 : f32 to vector<32x16xf32>
    %37 = arith.cmpf oge, %35, %36 : vector<32x16xf32>
    %cst_18 = arith.constant 1.000000e+00 : f32
    %cst_19 = arith.constant -1.000000e+00 : f32
    %38 = vector.broadcast %cst_18 : f32 to vector<32x16xf32>
    %39 = vector.broadcast %cst_19 : f32 to vector<32x16xf32>
    %40 = arith.select %37, %38, %39 : vector<32x16xi1>, vector<32x16xf32>
    %41 = math.absf %35 : vector<32x16xf32>
    %cst_20 = arith.constant 0.327591091 : f32
    %42 = vector.broadcast %cst_20 : f32 to vector<32x16xf32>
    %43 = arith.mulf %42, %41 : vector<32x16xf32>
    %cst_21 = arith.constant 1.000000e+00 : f32
    %44 = vector.broadcast %cst_21 : f32 to vector<32x16xf32>
    %45 = arith.addf %44, %43 : vector<32x16xf32>
    %46 = tpu.reciprocal %45 : vector<32x16xf32> -> vector<32x16xf32>
    %cst_22 = arith.constant 1.06140542 : f32
    %47 = vector.broadcast %cst_22 : f32 to vector<32x16xf32>
    %48 = arith.mulf %47, %46 : vector<32x16xf32>
    %cst_23 = arith.constant -1.45315206 : f32
    %49 = vector.broadcast %cst_23 : f32 to vector<32x16xf32>
    %50 = arith.addf %48, %49 : vector<32x16xf32>
    %51 = arith.mulf %50, %46 : vector<32x16xf32>
    %cst_24 = arith.constant 1.42141378 : f32
    %52 = vector.broadcast %cst_24 : f32 to vector<32x16xf32>
    %53 = arith.addf %51, %52 : vector<32x16xf32>
    %54 = arith.mulf %53, %46 : vector<32x16xf32>
    %cst_25 = arith.constant -0.284496725 : f32
    %55 = vector.broadcast %cst_25 : f32 to vector<32x16xf32>
    %56 = arith.addf %54, %55 : vector<32x16xf32>
    %57 = arith.mulf %56, %46 : vector<32x16xf32>
    %cst_26 = arith.constant 0.254829586 : f32
    %58 = vector.broadcast %cst_26 : f32 to vector<32x16xf32>
    %59 = arith.addf %57, %58 : vector<32x16xf32>
    %60 = arith.mulf %59, %46 : vector<32x16xf32>
    %cst_27 = arith.constant 0.000000e+00 : f32
    %61 = vector.broadcast %cst_27 : f32 to vector<32x16xf32>
    %62 = arith.subf %61, %41 : vector<32x16xf32>
    %63 = arith.mulf %62, %41 : vector<32x16xf32>
    %64 = math.exp %63 : vector<32x16xf32>
    %65 = arith.mulf %60, %64 : vector<32x16xf32>
    %cst_28 = arith.constant 1.000000e+00 : f32
    %66 = vector.broadcast %cst_28 : f32 to vector<32x16xf32>
    %67 = arith.subf %66, %65 : vector<32x16xf32>
    %68 = arith.mulf %40, %67 : vector<32x16xf32>
    %cst_29 = arith.constant 1.000000e+00 : f32
    %69 = vector.broadcast %cst_29 : f32 to vector<32x16xf32>
    %70 = arith.addf %69, %68 : vector<32x16xf32>
    %71 = arith.mulf %33, %70 : vector<32x16xf32>
    %c0_30 = arith.constant 0 : index
    %c0_31 = arith.constant 0 : index
    %72 = vector.load %arg6[%c0_30, %c0_31] : memref<32x16xf32, #tpu.memory_space<vmem>>, vector<32x16xf32>
    tpu.vector_store %arg6[%c0_30, %c0_31], %71 {strides = array<i32>} : memref<32x16xf32, #tpu.memory_space<vmem>>, vector<32x16xf32>,
    return
  }
  func.func @transform_0(%arg0: i32) -> (i32, i32) {
    %c0_i32 = arith.constant 0 : i32
    %c0_i32_0 = arith.constant 0 : i32
    return %arg0, %c0_i32 : i32, i32
  }
  func.func @transform_1(%arg0: i32) -> (i32, i32) {
    %c0_i32 = arith.constant 0 : i32
    %c0_i32_0 = arith.constant 0 : i32
    %c0_i32_1 = arith.constant 0 : i32
    return %c0_i32, %c0_i32_0 : i32, i32
  }
  func.func @transform_2(%arg0: i32) -> (i32, i32) {
    %c0_i32 = arith.constant 0 : i32
    %c0_i32_0 = arith.constant 0 : i32
    %c0_i32_1 = arith.constant 0 : i32
    return %c0_i32, %c0_i32_0 : i32, i32
  }
  func.func @transform_3(%arg0: i32) -> (i32, i32) {
    %c0_i32 = arith.constant 0 : i32
    %c0_i32_0 = arith.constant 0 : i32
    %c0_i32_1 = arith.constant 0 : i32
    return %c0_i32, %c0_i32_0 : i32, i32
  }
  func.func @transform_4(%arg0: i32) -> (i32, i32) {
    %c0_i32 = arith.constant 0 : i32
    %c0_i32_0 = arith.constant 0 : i32
    %c0_i32_1 = arith.constant 0 : i32
    return %c0_i32, %c0_i32_0 : i32, i32
  }
  func.func @transform_5(%arg0: i32) -> (i32, i32) {
    %c0_i32 = arith.constant 0 : i32
    %c0_i32_0 = arith.constant 0 : i32
    return %arg0, %c0_i32 : i32, i32
  }
}

module attributes {stable_mosaic.version = 11 : i64} {
  func.func @kernel(%arg0: i32, %arg1: memref<8x144xf32, #tpu.memory_space<vmem>>, %arg2: memref<144x32xf32, #tpu.memory_space<vmem>>, %arg3: memref<1x32xf32, #tpu.memory_space<vmem>>, %arg4: memref<1x32xf32, #tpu.memory_space<vmem>>, %arg5: memref<1x32xf32, #tpu.memory_space<vmem>>, %arg6: memref<8x32xf32, #tpu.memory_space<vmem>>) attributes {dimension_semantics = [#tpu.dimension_semantics<parallel>], iteration_bounds = array<i64: 1>, scalar_prefetch = 0 : i64, scratch_operands = 0 : i64, tpu.core_type = #tpu.core_type<tc>, window_params = [{transform_indices = @transform_0, window_bounds = array<i64: 8, 144>}, {pipeline_mode = #tpu.pipeline_mode<synchronous>, transform_indices = @transform_1, window_bounds = array<i64: 144, 32>}, {pipeline_mode = #tpu.pipeline_mode<synchronous>, transform_indices = @transform_2, window_bounds = array<i64: 1, 32>}, {pipeline_mode = #tpu.pipeline_mode<synchronous>, transform_indices = @transform_3, window_bounds = array<i64: 1, 32>}, {pipeline_mode = #tpu.pipeline_mode<synchronous>, transform_indices = @transform_4, window_bounds = array<i64: 1, 32>}, {transform_indices = @transform_5, window_bounds = array<i64: 8, 32>}]} {
    %c0 = arith.constant 0 : index
    %c0_0 = arith.constant 0 : index
    %0 = vector.load %arg1[%c0, %c0_0] : memref<8x144xf32, #tpu.memory_space<vmem>>, vector<8x144xf32>
    %c0_1 = arith.constant 0 : index
    %c0_2 = arith.constant 0 : index
    %1 = vector.load %arg2[%c0_1, %c0_2] : memref<144x32xf32, #tpu.memory_space<vmem>>, vector<144x32xf32>
    %cst = arith.constant dense<0.000000e+00> : vector<8x32xf32>
    %2 = tpu.matmul %0, %1, %cst {dimension_numbers = #tpu.dot_dimension_numbers<[1], [0], [0], [1], [0, 0, 1, 1], [], []>} : vector<8x144xf32>, vector<144x32xf32>, vector<8x32xf32> -> vector<8x32xf32>
    %c0_3 = arith.constant 0 : index
    %c0_4 = arith.constant 0 : index
    %3 = vector.load %arg3[%c0_3, %c0_4] : memref<1x32xf32, #tpu.memory_space<vmem>>, vector<1x32xf32>
    %4 = vector.broadcast %3 : vector<1x32xf32> to vector<8x32xf32>
    %5 = arith.addf %2, %4 : vector<8x32xf32>
    %cst_5 = arith.constant dense<0.000000e+00> : vector<8xf32>
    %6 = vector.multi_reduction <add>, %5, %cst_5 [1] : vector<8x32xf32> to vector<8xf32>
    %7 = vector.shape_cast %6 : vector<8xf32> to vector<8x1xf32>
    %cst_6 = arith.constant 3.125000e-02 : f32
    %8 = vector.broadcast %cst_6 : f32 to vector<8x1xf32>
    %9 = arith.mulf %7, %8 : vector<8x1xf32>
    %10 = arith.mulf %5, %5 : vector<8x32xf32>
    %cst_7 = arith.constant dense<0.000000e+00> : vector<8xf32>
    %11 = vector.multi_reduction <add>, %10, %cst_7 [1] : vector<8x32xf32> to vector<8xf32>
    %12 = vector.shape_cast %11 : vector<8xf32> to vector<8x1xf32>
    %cst_8 = arith.constant 3.125000e-02 : f32
    %13 = vector.broadcast %cst_8 : f32 to vector<8x1xf32>
    %14 = arith.mulf %12, %13 : vector<8x1xf32>
    %15 = arith.mulf %9, %9 : vector<8x1xf32>
    %16 = arith.subf %14, %15 : vector<8x1xf32>
    %cst_9 = arith.constant 0.000000e+00 : f32
    %17 = vector.broadcast %cst_9 : f32 to vector<8x1xf32>
    %18 = arith.maximumf %16, %17 : vector<8x1xf32>
    %19 = vector.broadcast %9 : vector<8x1xf32> to vector<8x32xf32>
    %20 = arith.subf %5, %19 : vector<8x32xf32>
    %cst_10 = arith.constant 9.99999997E-7 : f32
    %21 = vector.broadcast %cst_10 : f32 to vector<8x1xf32>
    %22 = arith.addf %18, %21 : vector<8x1xf32>
    %23 = math.rsqrt %22 : vector<8x1xf32>
    %24 = vector.broadcast %23 : vector<8x1xf32> to vector<8x32xf32>
    %25 = arith.mulf %20, %24 : vector<8x32xf32>
    %c0_11 = arith.constant 0 : index
    %c0_12 = arith.constant 0 : index
    %26 = vector.load %arg4[%c0_11, %c0_12] : memref<1x32xf32, #tpu.memory_space<vmem>>, vector<1x32xf32>
    %27 = vector.broadcast %26 : vector<1x32xf32> to vector<8x32xf32>
    %28 = arith.mulf %25, %27 : vector<8x32xf32>
    %c0_13 = arith.constant 0 : index
    %c0_14 = arith.constant 0 : index
    %29 = vector.load %arg5[%c0_13, %c0_14] : memref<1x32xf32, #tpu.memory_space<vmem>>, vector<1x32xf32>
    %30 = vector.broadcast %29 : vector<1x32xf32> to vector<8x32xf32>
    %31 = arith.addf %28, %30 : vector<8x32xf32>
    %cst_15 = arith.constant 5.000000e-01 : f32
    %32 = vector.broadcast %cst_15 : f32 to vector<8x32xf32>
    %33 = arith.mulf %32, %31 : vector<8x32xf32>
    %cst_16 = arith.constant 0.707106769 : f32
    %34 = vector.broadcast %cst_16 : f32 to vector<8x32xf32>
    %35 = arith.mulf %31, %34 : vector<8x32xf32>
    %cst_17 = arith.constant 0.000000e+00 : f32
    %36 = vector.broadcast %cst_17 : f32 to vector<8x32xf32>
    %37 = arith.cmpf oge, %35, %36 : vector<8x32xf32>
    %cst_18 = arith.constant 1.000000e+00 : f32
    %cst_19 = arith.constant -1.000000e+00 : f32
    %38 = vector.broadcast %cst_18 : f32 to vector<8x32xf32>
    %39 = vector.broadcast %cst_19 : f32 to vector<8x32xf32>
    %40 = arith.select %37, %38, %39 : vector<8x32xi1>, vector<8x32xf32>
    %41 = math.absf %35 : vector<8x32xf32>
    %cst_20 = arith.constant 0.327591091 : f32
    %42 = vector.broadcast %cst_20 : f32 to vector<8x32xf32>
    %43 = arith.mulf %42, %41 : vector<8x32xf32>
    %cst_21 = arith.constant 1.000000e+00 : f32
    %44 = vector.broadcast %cst_21 : f32 to vector<8x32xf32>
    %45 = arith.addf %44, %43 : vector<8x32xf32>
    %46 = tpu.reciprocal %45 : vector<8x32xf32> -> vector<8x32xf32>
    %cst_22 = arith.constant 1.06140542 : f32
    %47 = vector.broadcast %cst_22 : f32 to vector<8x32xf32>
    %48 = arith.mulf %47, %46 : vector<8x32xf32>
    %cst_23 = arith.constant -1.45315206 : f32
    %49 = vector.broadcast %cst_23 : f32 to vector<8x32xf32>
    %50 = arith.addf %48, %49 : vector<8x32xf32>
    %51 = arith.mulf %50, %46 : vector<8x32xf32>
    %cst_24 = arith.constant 1.42141378 : f32
    %52 = vector.broadcast %cst_24 : f32 to vector<8x32xf32>
    %53 = arith.addf %51, %52 : vector<8x32xf32>
    %54 = arith.mulf %53, %46 : vector<8x32xf32>
    %cst_25 = arith.constant -0.284496725 : f32
    %55 = vector.broadcast %cst_25 : f32 to vector<8x32xf32>
    %56 = arith.addf %54, %55 : vector<8x32xf32>
    %57 = arith.mulf %56, %46 : vector<8x32xf32>
    %cst_26 = arith.constant 0.254829586 : f32
    %58 = vector.broadcast %cst_26 : f32 to vector<8x32xf32>
    %59 = arith.addf %57, %58 : vector<8x32xf32>
    %60 = arith.mulf %59, %46 : vector<8x32xf32>
    %cst_27 = arith.constant 0.000000e+00 : f32
    %61 = vector.broadcast %cst_27 : f32 to vector<8x32xf32>
    %62 = arith.subf %61, %41 : vector<8x32xf32>
    %63 = arith.mulf %62, %41 : vector<8x32xf32>
    %64 = math.exp %63 : vector<8x32xf32>
    %65 = arith.mulf %60, %64 : vector<8x32xf32>
    %cst_28 = arith.constant 1.000000e+00 : f32
    %66 = vector.broadcast %cst_28 : f32 to vector<8x32xf32>
    %67 = arith.subf %66, %65 : vector<8x32xf32>
    %68 = arith.mulf %40, %67 : vector<8x32xf32>
    %cst_29 = arith.constant 1.000000e+00 : f32
    %69 = vector.broadcast %cst_29 : f32 to vector<8x32xf32>
    %70 = arith.addf %69, %68 : vector<8x32xf32>
    %71 = arith.mulf %33, %70 : vector<8x32xf32>
    %c0_30 = arith.constant 0 : index
    %c0_31 = arith.constant 0 : index
    %72 = vector.load %arg6[%c0_30, %c0_31] : memref<8x32xf32, #tpu.memory_space<vmem>>, vector<8x32xf32>
    tpu.vector_store %arg6[%c0_30, %c0_31], %71 {strides = array<i32>} : memref<8x32xf32, #tpu.memory_space<vmem>>, vector<8x32xf32>,
    return
  }
  func.func @transform_0(%arg0: i32) -> (i32, i32) {
    %c0_i32 = arith.constant 0 : i32
    %c0_i32_0 = arith.constant 0 : i32
    return %arg0, %c0_i32 : i32, i32
  }
  func.func @transform_1(%arg0: i32) -> (i32, i32) {
    %c0_i32 = arith.constant 0 : i32
    %c0_i32_0 = arith.constant 0 : i32
    %c0_i32_1 = arith.constant 0 : i32
    return %c0_i32, %c0_i32_0 : i32, i32
  }
  func.func @transform_2(%arg0: i32) -> (i32, i32) {
    %c0_i32 = arith.constant 0 : i32
    %c0_i32_0 = arith.constant 0 : i32
    %c0_i32_1 = arith.constant 0 : i32
    return %c0_i32, %c0_i32_0 : i32, i32
  }
  func.func @transform_3(%arg0: i32) -> (i32, i32) {
    %c0_i32 = arith.constant 0 : i32
    %c0_i32_0 = arith.constant 0 : i32
    %c0_i32_1 = arith.constant 0 : i32
    return %c0_i32, %c0_i32_0 : i32, i32
  }
  func.func @transform_4(%arg0: i32) -> (i32, i32) {
    %c0_i32 = arith.constant 0 : i32
    %c0_i32_0 = arith.constant 0 : i32
    %c0_i32_1 = arith.constant 0 : i32
    return %c0_i32, %c0_i32_0 : i32, i32
  }
  func.func @transform_5(%arg0: i32) -> (i32, i32) {
    %c0_i32 = arith.constant 0 : i32
    %c0_i32_0 = arith.constant 0 : i32
    return %arg0, %c0_i32 : i32, i32
  }
}

module attributes {stable_mosaic.version = 11 : i64} {
  func.func @kernel(%arg0: i32, %arg1: memref<2x288xf32, #tpu.memory_space<vmem>>, %arg2: memref<288x64xf32, #tpu.memory_space<vmem>>, %arg3: memref<1x64xf32, #tpu.memory_space<vmem>>, %arg4: memref<1x64xf32, #tpu.memory_space<vmem>>, %arg5: memref<1x64xf32, #tpu.memory_space<vmem>>, %arg6: memref<64x512xf32, #tpu.memory_space<vmem>>, %arg7: memref<1x512xf32, #tpu.memory_space<vmem>>, %arg8: memref<2x512xf32, #tpu.memory_space<vmem>>) attributes {dimension_semantics = [#tpu.dimension_semantics<parallel>], iteration_bounds = array<i64: 1>, scalar_prefetch = 0 : i64, scratch_operands = 0 : i64, tpu.core_type = #tpu.core_type<tc>, window_params = [{transform_indices = @transform_0, window_bounds = array<i64: 2, 288>}, {pipeline_mode = #tpu.pipeline_mode<synchronous>, transform_indices = @transform_1, window_bounds = array<i64: 288, 64>}, {pipeline_mode = #tpu.pipeline_mode<synchronous>, transform_indices = @transform_2, window_bounds = array<i64: 1, 64>}, {pipeline_mode = #tpu.pipeline_mode<synchronous>, transform_indices = @transform_3, window_bounds = array<i64: 1, 64>}, {pipeline_mode = #tpu.pipeline_mode<synchronous>, transform_indices = @transform_4, window_bounds = array<i64: 1, 64>}, {pipeline_mode = #tpu.pipeline_mode<synchronous>, transform_indices = @transform_5, window_bounds = array<i64: 64, 512>}, {pipeline_mode = #tpu.pipeline_mode<synchronous>, transform_indices = @transform_6, window_bounds = array<i64: 1, 512>}, {transform_indices = @transform_7, window_bounds = array<i64: 2, 512>}]} {
    %c0 = arith.constant 0 : index
    %c0_0 = arith.constant 0 : index
    %0 = vector.load %arg1[%c0, %c0_0] : memref<2x288xf32, #tpu.memory_space<vmem>>, vector<2x288xf32>
    %c0_1 = arith.constant 0 : index
    %c0_2 = arith.constant 0 : index
    %1 = vector.load %arg2[%c0_1, %c0_2] : memref<288x64xf32, #tpu.memory_space<vmem>>, vector<288x64xf32>
    %cst = arith.constant dense<0.000000e+00> : vector<2x64xf32>
    %2 = tpu.matmul %0, %1, %cst {dimension_numbers = #tpu.dot_dimension_numbers<[1], [0], [0], [1], [0, 0, 1, 1], [], []>} : vector<2x288xf32>, vector<288x64xf32>, vector<2x64xf32> -> vector<2x64xf32>
    %c0_3 = arith.constant 0 : index
    %c0_4 = arith.constant 0 : index
    %3 = vector.load %arg3[%c0_3, %c0_4] : memref<1x64xf32, #tpu.memory_space<vmem>>, vector<1x64xf32>
    %4 = vector.broadcast %3 : vector<1x64xf32> to vector<2x64xf32>
    %5 = arith.addf %2, %4 : vector<2x64xf32>
    %cst_5 = arith.constant dense<0.000000e+00> : vector<2xf32>
    %6 = vector.multi_reduction <add>, %5, %cst_5 [1] : vector<2x64xf32> to vector<2xf32>
    %7 = vector.shape_cast %6 : vector<2xf32> to vector<2x1xf32>
    %cst_6 = arith.constant 1.562500e-02 : f32
    %8 = vector.broadcast %cst_6 : f32 to vector<2x1xf32>
    %9 = arith.mulf %7, %8 : vector<2x1xf32>
    %10 = arith.mulf %5, %5 : vector<2x64xf32>
    %cst_7 = arith.constant dense<0.000000e+00> : vector<2xf32>
    %11 = vector.multi_reduction <add>, %10, %cst_7 [1] : vector<2x64xf32> to vector<2xf32>
    %12 = vector.shape_cast %11 : vector<2xf32> to vector<2x1xf32>
    %cst_8 = arith.constant 1.562500e-02 : f32
    %13 = vector.broadcast %cst_8 : f32 to vector<2x1xf32>
    %14 = arith.mulf %12, %13 : vector<2x1xf32>
    %15 = arith.mulf %9, %9 : vector<2x1xf32>
    %16 = arith.subf %14, %15 : vector<2x1xf32>
    %cst_9 = arith.constant 0.000000e+00 : f32
    %17 = vector.broadcast %cst_9 : f32 to vector<2x1xf32>
    %18 = arith.maximumf %16, %17 : vector<2x1xf32>
    %19 = vector.broadcast %9 : vector<2x1xf32> to vector<2x64xf32>
    %20 = arith.subf %5, %19 : vector<2x64xf32>
    %cst_10 = arith.constant 9.99999997E-7 : f32
    %21 = vector.broadcast %cst_10 : f32 to vector<2x1xf32>
    %22 = arith.addf %18, %21 : vector<2x1xf32>
    %23 = math.rsqrt %22 : vector<2x1xf32>
    %24 = vector.broadcast %23 : vector<2x1xf32> to vector<2x64xf32>
    %25 = arith.mulf %20, %24 : vector<2x64xf32>
    %c0_11 = arith.constant 0 : index
    %c0_12 = arith.constant 0 : index
    %26 = vector.load %arg4[%c0_11, %c0_12] : memref<1x64xf32, #tpu.memory_space<vmem>>, vector<1x64xf32>
    %27 = vector.broadcast %26 : vector<1x64xf32> to vector<2x64xf32>
    %28 = arith.mulf %25, %27 : vector<2x64xf32>
    %c0_13 = arith.constant 0 : index
    %c0_14 = arith.constant 0 : index
    %29 = vector.load %arg5[%c0_13, %c0_14] : memref<1x64xf32, #tpu.memory_space<vmem>>, vector<1x64xf32>
    %30 = vector.broadcast %29 : vector<1x64xf32> to vector<2x64xf32>
    %31 = arith.addf %28, %30 : vector<2x64xf32>
    %cst_15 = arith.constant 5.000000e-01 : f32
    %32 = vector.broadcast %cst_15 : f32 to vector<2x64xf32>
    %33 = arith.mulf %32, %31 : vector<2x64xf32>
    %cst_16 = arith.constant 0.707106769 : f32
    %34 = vector.broadcast %cst_16 : f32 to vector<2x64xf32>
    %35 = arith.mulf %31, %34 : vector<2x64xf32>
    %cst_17 = arith.constant 0.000000e+00 : f32
    %36 = vector.broadcast %cst_17 : f32 to vector<2x64xf32>
    %37 = arith.cmpf oge, %35, %36 : vector<2x64xf32>
    %cst_18 = arith.constant 1.000000e+00 : f32
    %cst_19 = arith.constant -1.000000e+00 : f32
    %38 = vector.broadcast %cst_18 : f32 to vector<2x64xf32>
    %39 = vector.broadcast %cst_19 : f32 to vector<2x64xf32>
    %40 = arith.select %37, %38, %39 : vector<2x64xi1>, vector<2x64xf32>
    %41 = math.absf %35 : vector<2x64xf32>
    %cst_20 = arith.constant 0.327591091 : f32
    %42 = vector.broadcast %cst_20 : f32 to vector<2x64xf32>
    %43 = arith.mulf %42, %41 : vector<2x64xf32>
    %cst_21 = arith.constant 1.000000e+00 : f32
    %44 = vector.broadcast %cst_21 : f32 to vector<2x64xf32>
    %45 = arith.addf %44, %43 : vector<2x64xf32>
    %46 = tpu.reciprocal %45 : vector<2x64xf32> -> vector<2x64xf32>
    %cst_22 = arith.constant 1.06140542 : f32
    %47 = vector.broadcast %cst_22 : f32 to vector<2x64xf32>
    %48 = arith.mulf %47, %46 : vector<2x64xf32>
    %cst_23 = arith.constant -1.45315206 : f32
    %49 = vector.broadcast %cst_23 : f32 to vector<2x64xf32>
    %50 = arith.addf %48, %49 : vector<2x64xf32>
    %51 = arith.mulf %50, %46 : vector<2x64xf32>
    %cst_24 = arith.constant 1.42141378 : f32
    %52 = vector.broadcast %cst_24 : f32 to vector<2x64xf32>
    %53 = arith.addf %51, %52 : vector<2x64xf32>
    %54 = arith.mulf %53, %46 : vector<2x64xf32>
    %cst_25 = arith.constant -0.284496725 : f32
    %55 = vector.broadcast %cst_25 : f32 to vector<2x64xf32>
    %56 = arith.addf %54, %55 : vector<2x64xf32>
    %57 = arith.mulf %56, %46 : vector<2x64xf32>
    %cst_26 = arith.constant 0.254829586 : f32
    %58 = vector.broadcast %cst_26 : f32 to vector<2x64xf32>
    %59 = arith.addf %57, %58 : vector<2x64xf32>
    %60 = arith.mulf %59, %46 : vector<2x64xf32>
    %cst_27 = arith.constant 0.000000e+00 : f32
    %61 = vector.broadcast %cst_27 : f32 to vector<2x64xf32>
    %62 = arith.subf %61, %41 : vector<2x64xf32>
    %63 = arith.mulf %62, %41 : vector<2x64xf32>
    %64 = math.exp %63 : vector<2x64xf32>
    %65 = arith.mulf %60, %64 : vector<2x64xf32>
    %cst_28 = arith.constant 1.000000e+00 : f32
    %66 = vector.broadcast %cst_28 : f32 to vector<2x64xf32>
    %67 = arith.subf %66, %65 : vector<2x64xf32>
    %68 = arith.mulf %40, %67 : vector<2x64xf32>
    %cst_29 = arith.constant 1.000000e+00 : f32
    %69 = vector.broadcast %cst_29 : f32 to vector<2x64xf32>
    %70 = arith.addf %69, %68 : vector<2x64xf32>
    %71 = arith.mulf %33, %70 : vector<2x64xf32>
    %c0_30 = arith.constant 0 : index
    %c0_31 = arith.constant 0 : index
    %72 = vector.load %arg6[%c0_30, %c0_31] : memref<64x512xf32, #tpu.memory_space<vmem>>, vector<64x512xf32>
    %cst_32 = arith.constant dense<0.000000e+00> : vector<2x512xf32>
    %73 = tpu.matmul %71, %72, %cst_32 {dimension_numbers = #tpu.dot_dimension_numbers<[1], [0], [0], [1], [0, 0, 1, 1], [], []>} : vector<2x64xf32>, vector<64x512xf32>, vector<2x512xf32> -> vector<2x512xf32>
    %c0_33 = arith.constant 0 : index
    %c0_34 = arith.constant 0 : index
    %74 = vector.load %arg7[%c0_33, %c0_34] : memref<1x512xf32, #tpu.memory_space<vmem>>, vector<1x512xf32>
    %75 = vector.broadcast %74 : vector<1x512xf32> to vector<2x512xf32>
    %76 = arith.addf %73, %75 : vector<2x512xf32>
    %c0_35 = arith.constant 0 : index
    %c0_36 = arith.constant 0 : index
    %77 = vector.load %arg8[%c0_35, %c0_36] : memref<2x512xf32, #tpu.memory_space<vmem>>, vector<2x512xf32>
    tpu.vector_store %arg8[%c0_35, %c0_36], %76 {strides = array<i32>} : memref<2x512xf32, #tpu.memory_space<vmem>>, vector<2x512xf32>,
    return
  }
  func.func @transform_0(%arg0: i32) -> (i32, i32) {
    %c0_i32 = arith.constant 0 : i32
    %c0_i32_0 = arith.constant 0 : i32
    return %arg0, %c0_i32 : i32, i32
  }
  func.func @transform_1(%arg0: i32) -> (i32, i32) {
    %c0_i32 = arith.constant 0 : i32
    %c0_i32_0 = arith.constant 0 : i32
    %c0_i32_1 = arith.constant 0 : i32
    return %c0_i32, %c0_i32_0 : i32, i32
  }
  func.func @transform_2(%arg0: i32) -> (i32, i32) {
    %c0_i32 = arith.constant 0 : i32
    %c0_i32_0 = arith.constant 0 : i32
    %c0_i32_1 = arith.constant 0 : i32
    return %c0_i32, %c0_i32_0 : i32, i32
  }
  func.func @transform_3(%arg0: i32) -> (i32, i32) {
    %c0_i32 = arith.constant 0 : i32
    %c0_i32_0 = arith.constant 0 : i32
    %c0_i32_1 = arith.constant 0 : i32
    return %c0_i32, %c0_i32_0 : i32, i32
  }
  func.func @transform_4(%arg0: i32) -> (i32, i32) {
    %c0_i32 = arith.constant 0 : i32
    %c0_i32_0 = arith.constant 0 : i32
    %c0_i32_1 = arith.constant 0 : i32
    return %c0_i32, %c0_i32_0 : i32, i32
  }
  func.func @transform_5(%arg0: i32) -> (i32, i32) {
    %c0_i32 = arith.constant 0 : i32
    %c0_i32_0 = arith.constant 0 : i32
    %c0_i32_1 = arith.constant 0 : i32
    return %c0_i32, %c0_i32_0 : i32, i32
  }
  func.func @transform_6(%arg0: i32) -> (i32, i32) {
    %c0_i32 = arith.constant 0 : i32
    %c0_i32_0 = arith.constant 0 : i32
    %c0_i32_1 = arith.constant 0 : i32
    return %c0_i32, %c0_i32_0 : i32, i32
  }
  func.func @transform_7(%arg0: i32) -> (i32, i32) {
    %c0_i32 = arith.constant 0 : i32
    %c0_i32_0 = arith.constant 0 : i32
    return %arg0, %c0_i32 : i32, i32
  }
}

</mosaic_0001>

<bundles_post_ra>
// kernel: conv_block2_forward.5
= control target key start
LH: loop header
LB: loop body
LE: loop exit
PB: predicated region body
PF: predicated region fallthrough
CT: control target
= control target key end

     0   :  { %vm40_vm0 = vcmask 588800   ;;  %vm138_vm1 = vcmask 130048   ;;  %s583_s1 = inlined_call_operand.vmem [shape: f32[72,16], index: 1, kind: input, shape index: {}]   ;;  %s584_s0 = inlined_call_operand.vmem [shape: f32[32,72], index: 0, kind: input, shape index: {}]   ;;  %s585_s2 = inlined_call_operand.vmem [shape: f32[1,16], index: 2, kind: input, shape index: {}]   ;;  %s586_s3 = inlined_call_operand.vmem [shape: f32[1,16], index: 3, kind: input, shape index: {}]   ;;  %s587_s4 = inlined_call_operand.vmem [shape: f32[1,16], index: 4, kind: input, shape index: {}]   ;;  %s588_s5 = inlined_call_operand.vmem [shape: f32[32,16], index: 5, kind: output, shape index: {}]  }
   0x1   :  { %v32_v0 = vld [vmem:[%s583_s1 + $0x40] sm:$0xff]  ;;  %v31_v1 = vld [vmem:[%s583_s1 + $0x38] sm:$0xff]  ;;  %v30_v2 = vld [vmem:[%s583_s1 + $0x30] sm:$0xff] }
   0x2   :  { %357 = vmatprep.subr.mxu0 %v32_v0  ;;  %381 = vmatprep.subr.mxu1 %v32_v0  ;;  %v29_v3 = vld [vmem:[%s583_s1 + $0x28] sm:$0xff]  ;;  %v28_v4 = vld [vmem:[%s583_s1 + $0x20] sm:$0xff]  ;;  %v27_v5 = vld [vmem:[%s583_s1 + $0x18] sm:$0xff] }
   0x3   :  { %358 = vmatpush3.msra.mxu0 %v32_v0  ;;  %390 = vmatpush3.msra.mxu1 %v32_v0  ;;  %v26_v6 = vld [vmem:[%s583_s1 + $0x10] sm:$0xff]  ;;  %v25_v7 = vld [vmem:[%s583_s1 + $0x8] sm:$0xff]  ;;  %v24_v8 = vld [vmem:[%s583_s1] sm:$0xff] }
   0x4   :  { %359 = vmatprep.subr.mxu0 %v31_v1  ;;  %382 = vmatprep.subr.mxu1 %v31_v1  ;;  %v20_v9 = vld [vmem:[%s584_s0] sm:$0xff]  ;;  %v22_v10 = vld [vmem:[%s584_s0 + $0x10] sm:$0xff]  ;;  %v21_v11 = vld [vmem:[%s584_s0 + $0x8] sm:$0xff] }
   0x5   :  { %360 = vmatpush3.msra.mxu0 %v31_v1  ;;  %391 = vmatpush3.msra.mxu1 %v31_v1  ;;  %v23_v12 = vld [vmem:[%s584_s0 + $0x18] sm:$0xff]  ;;  %v337_v13 = vld [vmem:[%s585_s2] ss:$0 sm:$0xff] }
   0x6   :  { %361 = vmatprep.subr.mxu0 %v30_v2  ;;  %383 = vmatprep.subr.mxu1 %v30_v2 }
   0x7   :  { %362 = vmatpush3.msra.mxu0 %v30_v2  ;;  %392 = vmatpush3.msra.mxu1 %v30_v2 }
   0x8   :  { %363 = vmatprep.subr.mxu0 %v29_v3  ;;  %384 = vmatprep.subr.mxu1 %v29_v3 }
   0x9   :  { %364 = vmatpush3.msra.mxu0 %v29_v3  ;;  %393 = vmatpush3.msra.mxu1 %v29_v3 }
   0xa   :  { %365 = vmatprep.subr.mxu0 %v28_v4  ;;  %385 = vmatprep.subr.mxu1 %v28_v4 }
   0xb   :  { %366 = vmatpush3.msra.mxu0 %v28_v4  ;;  %394 = vmatpush3.msra.mxu1 %v28_v4 }
   0xc   :  { %367 = vmatprep.subr.mxu0 %v27_v5  ;;  %386 = vmatprep.subr.mxu1 %v27_v5 }
   0xd   :  { %368 = vmatpush3.msra.mxu0 %v27_v5  ;;  %395 = vmatpush3.msra.mxu1 %v27_v5  ;;  %v342_v5 = vld [vmem:[%s586_s3] ss:$0 sm:$0xff] }
   0xe   :  { %369 = vmatprep.subr.mxu0 %v26_v6  ;;  %387 = vmatprep.subr.mxu1 %v26_v6 }
   0xf   :  { %370 = vmatpush3.msra.mxu0 %v26_v6  ;;  %396 = vmatpush3.msra.mxu1 %v26_v6 }
  0x10   :  { %371 = vmatprep.subr.mxu0 %v25_v7  ;;  %388 = vmatprep.subr.mxu1 %v25_v7 }
  0x11   :  { %372 = vmatpush3.msra.mxu0 %v25_v7  ;;  %397 = vmatpush3.msra.mxu1 %v25_v7 }
  0x12   :  { %373 = vmatprep.subr.mxu0 %v24_v8  ;;  %389 = vmatprep.subr.mxu1 %v24_v8 }
  0x13   :  { %374 = vmatpush3.msra.mxu0 %v24_v8  ;;  %398 = vmatpush3.msra.mxu1 %v24_v8  ;;  %v343_v8 = vld [vmem:[%s587_s4] ss:$0 sm:$0xff] }
  0x14   :  { %375 = vmatprep.mubr.msk.f32.mxu0 %vm40_vm0, %v20_v9  ;;  %378 = vmatprep.mubr.msk.f32.mxu1 %vm40_vm0, %v22_v10 }
  0x15   :  { %376 = vmatmul.mubr.msk.f32.vlgmr.msra.gmra.mxu0 %vm40_vm0, %v21_v11  ;;  %379 = vmatmul.mubr.msk.f32.vlgmr.msra.gmra.mxu1 %vm40_vm0, %v23_v12 }
  0xd5   :  { %v377_v14 = vpop.f32.mrf.mxu0  ;;  %v380_v15 = vpop.f32.mrf.mxu1 }
  0xd6   :  { %v497_v16 = vadd.f32 %v377_v14, %v337_v13  ;;  %v499_v17 = vadd.f32 %v380_v15, %v337_v13 }
  0xd7   :  { %v119_v18 = vpop.f32.mrf.mxu0  ;;  %v129_v19 = vpop.f32.mrf.mxu1 }
  0xd8   :  { %v501_v20 = vadd.f32 %v337_v13, %v119_v18  ;;  %v503_v21 = vadd.f32 %v337_v13, %v129_v19  ;;  %v148_v22 = vsel %vm138_vm1, %v499_v17, 0.0  ;;  %v142_v23 = vsel %vm138_vm1, %v497_v16, 0.0 }
  0xd9   :  { %149 = vadd.xlane.f32.xlu1 %v148_v22  ;;  %143 = vadd.xlane.f32.xlu0 %v142_v23  ;;  %v156_v26 = vmul.f32 %v497_v16, %v497_v16  ;;  %v158_v30 = vmul.f32 %v499_v17, %v499_v17 }
  0xda   :  { %v145_v24 = vsel %vm138_vm1, %v503_v21, 0.0  ;;  %v139_v25 = vsel %vm138_vm1, %v501_v20, 0.0  ;;  %v155_v27 = vmul.f32 %v501_v20, %v501_v20  ;;  %v157_v31 = vmul.f32 %v503_v21, %v503_v21 }
  0xdb   :  { %v162_v28 = vsel %vm138_vm1, %v156_v26, 0.0  ;;  %v168_v32 = vsel %vm138_vm1, %v158_v30, 0.0 }
  0xdc   :  { %v159_v29 = vsel %vm138_vm1, %v155_v27, 0.0  ;;  %v165_v33 = vsel %vm138_vm1, %v157_v31, 0.0 }
  0xdd   :  { %146 = vadd.xlane.f32.xlu1 %v145_v24  ;;  %140 = vadd.xlane.f32.xlu0 %v139_v25 }
  0xe1   :  { %163 = vadd.xlane.f32.xlu1 %v162_v28  ;;  %160 = vadd.xlane.f32.xlu0 %v159_v29 }
  0xe5   :  { %169 = vadd.xlane.f32.xlu1 %v168_v32  ;;  %166 = vadd.xlane.f32.xlu0 %v165_v33 }
 0x162   :  { %v150_v34 = vpop.xlane.xlu1 %149  ;;  %v144_v35 = vpop.xlane.xlu0 %143 }
 0x163   :  { %v152_v38 = vmul.f32 0.0625, %v144_v35  ;;  %v154_v40 = vmul.f32 0.0625, %v150_v34 }
 0x165   :  { %v176_v44 = vmul.f32 %v152_v38, %v152_v38  ;;  %v178_v50 = vmul.f32 %v154_v40, %v154_v40  ;;  %v188_v2 = vsub.f32 %v497_v16, %v152_v38  ;;  %v190_v10 = vsub.f32 %v499_v17, %v154_v40 }
 0x166   :  { %v147_v36 = vpop.xlane.xlu1 %146  ;;  %v141_v37 = vpop.xlane.xlu0 %140 }
 0x167   :  { %v151_v39 = vmul.f32 0.0625, %v141_v37  ;;  %v153_v41 = vmul.f32 0.0625, %v147_v36 }
 0x169   :  { %v175_v45 = vmul.f32 %v151_v39, %v151_v39  ;;  %v177_v51 = vmul.f32 %v153_v41, %v153_v41  ;;  %v187_v4 = vsub.f32 %v501_v20, %v151_v39  ;;  %v189_v13 = vsub.f32 %v503_v21, %v153_v41 }
 0x16a   :  { %v164_v42 = vpop.xlane.xlu1 %163  ;;  %v161_v43 = vpop.xlane.xlu0 %160 }
 0x16b   :  { %v172_v46 = vmul.f32 0.0625, %v164_v42  ;;  %v171_v47 = vmul.f32 0.0625, %v161_v43 }
 0x16d   :  { %v180_v48 = vsub.f32 %v172_v46, %v176_v44  ;;  %v179_v49 = vsub.f32 %v171_v47, %v175_v45 }
 0x16e   :  { %v170_v52 = vpop.xlane.xlu1 %169  ;;  %v167_v53 = vpop.xlane.xlu0 %166 }
 0x16f   :  { %v184_v54 = vmax.f32 %v180_v48, 0.0  ;;  %v183_v55 = vmax.f32 %v179_v49, 0.0  ;;  %v174_v56 = vmul.f32 0.0625, %v170_v52  ;;  %v173_v57 = vmul.f32 0.0625, %v167_v53 }
 0x171   :  { %v192_v58 = vadd.f32 1e-06, %v184_v54  ;;  %v191_v59 = vadd.f32 1e-06, %v183_v55  ;;  %v182_v60 = vsub.f32 %v174_v56, %v178_v50  ;;  %v181_v61 = vsub.f32 %v173_v57, %v177_v51 }
 0x173   :  { %400 = vrsqrt.f32 %v192_v58  ;;  %v186_v62 = vmax.f32 %v182_v60, 0.0  ;;  %v185_v63 = vmax.f32 %v181_v61, 0.0 }
 0x174   :  { %402 = vrsqrt.f32 %v191_v59 }
 0x175   :  { %v194_v0 = vadd.f32 1e-06, %v186_v62  ;;  %v193_v1 = vadd.f32 1e-06, %v185_v63 }
 0x177   :  { %404 = vrsqrt.f32 %v194_v0 }
 0x178   :  { %406 = vrsqrt.f32 %v193_v1 }
 0x180   :  { %v401_v3 = vpop.eup %400 }
 0x181   :  { %v403_v6 = vpop.eup %402  ;;  %v200_v7 = vmul.f32 %v401_v3, %v188_v2 }
 0x182   :  { %v199_v9 = vmul.f32 %v403_v6, %v187_v4 }
 0x183   :  { %v211_v11 = vmul.f32 %v342_v5, %v200_v7 }
 0x184   :  { %v405_v12 = vpop.eup %404  ;;  %v210_v14 = vmul.f32 %v342_v5, %v199_v9 }
 0x185   :  { %v407_v15 = vpop.eup %406  ;;  %v535_v16 = vadd.f32 %v343_v8, %v211_v11  ;;  %v202_v18 = vmul.f32 %v405_v12, %v190_v10 }
 0x186   :  { %v537_v19 = vadd.f32 %v343_v8, %v210_v14  ;;  %v201_v20 = vmul.f32 %v407_v15, %v189_v13 }
 0x187   :  { %v540_v22 = vmul.f32 0.70710677, %v535_v16  ;;  %v213_v23 = vmul.f32 %v342_v5, %v202_v18 }
 0x188   :  { %v543_v24 = vmul.f32 0.70710677, %v537_v19  ;;  %v212_v17 = vmul.f32 %v342_v5, %v201_v20 }
 0x189   :  { %v242_v25 = vand.u32 2147483647, %v540_v22  ;;  %v546_v26 = vadd.f32 %v343_v8, %v213_v23  ;;  %vm234_vm2 = vcmp.ge.f32.partialorder %v540_v22, 0.0 }
 0x18a   :  { %v241_v21 = vand.u32 2147483647, %v543_v24  ;;  %v549_v27 = vadd.f32 %v343_v8, %v212_v17  ;;  %vm233_vm3 = vcmp.ge.f32.partialorder %v543_v24, 0.0 }
 0x18b   :  { %v246_v28 = vmul.f32 0.3275911, %v242_v25  ;;  %v552_v30 = vmul.f32 0.70710677, %v546_v26  ;;  %v294_v39 = vsub.f32 0.0, %v242_v25 }
 0x18c   :  { %v245_v29 = vmul.f32 0.3275911, %v241_v21  ;;  %v555_v32 = vmul.f32 0.70710677, %v549_v27  ;;  %v293_v41 = vsub.f32 0.0, %v241_v21 }
 0x18d   :  { %v250_v31 = vadd.f32 1.0, %v246_v28  ;;  %v244_v34 = vand.u32 2147483647, %v552_v30  ;;  %v298_v42 = vmul.f32 %v294_v39, %v242_v25  ;;  %vm236_vm4 = vcmp.ge.f32.partialorder %v552_v30, 0.0 }
 0x18e   :  { %v249_v33 = vadd.f32 1.0, %v245_v29  ;;  %v243_v36 = vand.u32 2147483647, %v555_v32  ;;  %v297_v43 = vmul.f32 %v293_v41, %v241_v21  ;;  %vm235_vm5 = vcmp.ge.f32.partialorder %v555_v32, 0.0 }
 0x18f   :  { %408 = vrcp.f32 %v250_v31  ;;  %v248_v35 = vmul.f32 0.3275911, %v244_v34  ;;  %v296_v44 = vsub.f32 0.0, %v244_v34  ;;  %v303_v48 = vmul.f32 1.442695, %v298_v42 }
 0x190   :  { %410 = vrcp.f32 %v249_v33  ;;  %v247_v38 = vmul.f32 0.3275911, %v243_v36  ;;  %v295_v49 = vsub.f32 0.0, %v243_v36  ;;  %v301_v51 = vmul.f32 1.442695, %v297_v43 }
 0x191   :  { %v252_v37 = vadd.f32 1.0, %v248_v35  ;;  %v300_v52 = vmul.f32 %v296_v44, %v244_v34 }
 0x192   :  { %v251_v40 = vadd.f32 1.0, %v247_v38  ;;  %v299_v57 = vmul.f32 %v295_v49, %v243_v36  ;;  %v424_v38 = vmov -1.0  }
 0x193   :  { %412 = vrcp.f32 %v252_v37  ;;  %v307_v60 = vmul.f32 1.442695, %v300_v52  ;;  %v238_v39 = vsel %vm234_vm2, 1.0, %v424_v38  ;;  %v237_v44 = vsel %vm233_vm3, 1.0, %v424_v38 }
 0x194   :  { %414 = vrcp.f32 %v251_v40  ;;  %v305_v3 = vmul.f32 1.442695, %v299_v57 }
 0x195   :  { %416 = vpow2.f32 %v303_v48 }
 0x196   :  { %418 = vpow2.f32 %v301_v51 }
 0x197   :  { %420 = vpow2.f32 %v307_v60  ;;  %v227_v60 = vmul.f32 0.5, %v549_v27 }
 0x198   :  { %422 = vpow2.f32 %v305_v3 }
 0x19c   :  { %v409_v45 = vpop.eup %408 }
 0x19d   :  { %v411_v46 = vpop.eup %410  ;;  %v258_v47 = vmul.f32 1.0614054, %v409_v45 }
 0x19e   :  { %v257_v50 = vmul.f32 1.0614054, %v411_v46 }
 0x19f   :  { %v262_v53 = vadd.f32 -1.4531521, %v258_v47  ;;  %v226_v47 = vmul.f32 0.5, %v535_v16 }
 0x1a0   :  { %v261_v54 = vadd.f32 -1.4531521, %v257_v50  ;;  %v413_v55 = vpop.eup %412  ;;  %v225_v50 = vmul.f32 0.5, %v537_v19  ;;  %v228_v19 = vmul.f32 0.5, %v546_v26 }
 0x1a1   :  { %v266_v56 = vmul.f32 %v409_v45, %v262_v53  ;;  %v260_v59 = vmul.f32 1.0614054, %v413_v55  ;;  %v415_v62 = vpop.eup %414 }
 0x1a2   :  { %v265_v58 = vmul.f32 %v411_v46, %v261_v54  ;;  %v259_v2 = vmul.f32 1.0614054, %v415_v62  ;;  %v417_v25 = vpop.eup %416  ;;  %v240_v54 = vsel %vm236_vm4, 1.0, %v424_v38 }
 0x1a3   :  { %v270_v61 = vadd.f32 1.4214138, %v266_v56  ;;  %v264_v0 = vadd.f32 -1.4531521, %v260_v59  ;;  %v419_v29 = vpop.eup %418 }
 0x1a4   :  { %v269_v63 = vadd.f32 1.4214138, %v265_v58  ;;  %v263_v7 = vadd.f32 -1.4531521, %v259_v2  ;;  %v421_v42 = vpop.eup %420  ;;  %v239_v58 = vsel %vm235_vm5, 1.0, %v424_v38 }
 0x1a5   :  { %v274_v1 = vmul.f32 %v409_v45, %v270_v61  ;;  %v268_v5 = vmul.f32 %v413_v55, %v264_v0  ;;  %v423_v49 = vpop.eup %422 }
 0x1a6   :  { %v273_v4 = vmul.f32 %v411_v46, %v269_v63  ;;  %v267_v11 = vmul.f32 %v415_v62, %v263_v7 }
 0x1a7   :  { %v278_v6 = vadd.f32 -0.28449672, %v274_v1  ;;  %v272_v9 = vadd.f32 1.4214138, %v268_v5 }
 0x1a8   :  { %v277_v8 = vadd.f32 -0.28449672, %v273_v4  ;;  %v271_v15 = vadd.f32 1.4214138, %v267_v11 }
 0x1a9   :  { %v282_v10 = vmul.f32 %v409_v45, %v278_v6  ;;  %v276_v13 = vmul.f32 %v413_v55, %v272_v9 }
 0x1aa   :  { %v281_v12 = vmul.f32 %v411_v46, %v277_v8  ;;  %v275_v17 = vmul.f32 %v415_v62, %v271_v15 }
 0x1ab   :  { %v286_v14 = vadd.f32 0.2548296, %v282_v10  ;;  %v280_v20 = vadd.f32 -0.28449672, %v276_v13 }
 0x1ac   :  { %v285_v18 = vadd.f32 0.2548296, %v281_v12  ;;  %v279_v33 = vadd.f32 -0.28449672, %v275_v17 }
 0x1ad   :  { %v290_v23 = vmul.f32 %v409_v45, %v286_v14  ;;  %v284_v28 = vmul.f32 %v413_v55, %v280_v20 }
 0x1ae   :  { %v289_v21 = vmul.f32 %v411_v46, %v285_v18  ;;  %v283_v37 = vmul.f32 %v415_v62, %v279_v33 }
 0x1af   :  { %v310_v31 = vmul.f32 %v417_v25, %v290_v23  ;;  %v288_v35 = vadd.f32 0.2548296, %v284_v28 }
 0x1b0   :  { %v309_v34 = vmul.f32 %v419_v29, %v289_v21  ;;  %v287_v45 = vadd.f32 0.2548296, %v283_v37 }
 0x1b1   :  { %v314_v36 = vsub.f32 1.0, %v310_v31  ;;  %v292_v41 = vmul.f32 %v413_v55, %v288_v35 }
 0x1b2   :  { %v313_v40 = vsub.f32 1.0, %v309_v34  ;;  %v291_v24 = vmul.f32 %v415_v62, %v287_v45 }
 0x1b3   :  { %v318_v43 = vmul.f32 %v314_v36, %v238_v39  ;;  %v312_v22 = vmul.f32 %v421_v42, %v292_v41 }
 0x1b4   :  { %v317_v46 = vmul.f32 %v313_v40, %v237_v44  ;;  %v311_v55 = vmul.f32 %v423_v49, %v291_v24 }
 0x1b5   :  { %v322_v48 = vadd.f32 1.0, %v318_v43  ;;  %v316_v52 = vsub.f32 1.0, %v312_v22 }
 0x1b6   :  { %v321_v51 = vadd.f32 1.0, %v317_v46  ;;  %v315_v16 = vsub.f32 1.0, %v311_v55 }
 0x1b7   :  { %v326_v53 = vmul.f32 %v322_v48, %v226_v47  ;;  %v320_v57 = vmul.f32 %v316_v52, %v240_v54 }
 0x1b8   :  { %v325_v56 = vmul.f32 %v321_v51, %v225_v50  ;;  %v319_v59 = vmul.f32 %v315_v16, %v239_v58 }
 0x1b9   :  { %330 = vst.msk [vmem:[%s588_s5 + $0x8] sm:$0xff] %vm138_vm1, %v326_v53  ;;  %v324_v30 = vadd.f32 1.0, %v320_v57 }
 0x1ba   :  { %329 = vst.msk [vmem:[%s588_s5] sm:$0xff] %vm138_vm1, %v325_v56  ;;  %v323_v61 = vadd.f32 1.0, %v319_v59 }
 0x1bb   :  { %v328_v32 = vmul.f32 %v324_v30, %v228_v19 }
 0x1bc   :  { %v327_v62 = vmul.f32 %v323_v61, %v227_v60 }
 0x1bd   :  { %332 = vst.msk [vmem:[%s588_s5 + $0x18] sm:$0xff] %vm138_vm1, %v328_v32 }
 0x1be   :  { %331 = vst.msk [vmem:[%s588_s5 + $0x10] sm:$0xff] %vm138_vm1, %v327_v62 }

// kernel: conv_block2_forward.6
= control target key start
LH: loop header
LB: loop body
LE: loop exit
PB: predicated region body
PF: predicated region fallthrough
CT: control target
= control target key end

     0   :  { %v197_v0 = vmov 0.0   ;;  %vm47_vm0 = vcmask 130048   ;;  %vm121_vm1 = vcmask 261120   ;;  %v198_v63 = vmov -1.0   ;;  %s304_s1 = inlined_call_operand.vmem [shape: f32[144,32], index: 1, kind: input, shape index: {}]   ;;  %s305_s0 = inlined_call_operand.vmem [shape: f32[8,144], index: 0, kind: input, shape index: {}]   ;;  %s306_s2 = inlined_call_operand.vmem [shape: f32[1,32], index: 2, kind: input, shape index: {}]   ;;  %s307_s3 = inlined_call_operand.vmem [shape: f32[1,32], index: 3, kind: input, shape index: {}]   ;;  %s308_s4 = inlined_call_operand.vmem [shape: f32[1,32], index: 4, kind: input, shape index: {}]   ;;  %s309_s5 = inlined_call_operand.vmem [shape: f32[8,32], index: 5, kind: output, shape index: {}]  }
   0x1   :  { %51 = vmatprep.subr.mxu0 %v197_v0  ;;  %v37_v1 = vld [vmem:[%s304_s1 + $0x78] sm:$0xff]  ;;  %v36_v2 = vld [vmem:[%s304_s1 + $0x70] sm:$0xff]  ;;  %v35_v3 = vld [vmem:[%s304_s1 + $0x68] sm:$0xff] }
   0x2   :  { %52 = vmatpush1.msra.mxu0 %v37_v1  ;;  %v34_v4 = vld [vmem:[%s304_s1 + $0x60] sm:$0xff]  ;;  %v33_v5 = vld [vmem:[%s304_s1 + $0x58] sm:$0xff]  ;;  %v21_v6 = vld [vmem:[%s305_s0 + $0x8] sm:$0xff] }
   0x3   :  { %53 = vmatprep.subr.mxu0 %v197_v0  ;;  %186 = vmatprep.mubr.msk.f32.mxu0 %vm47_vm0, %v21_v6  ;;  %v32_v7 = vld [vmem:[%s304_s1 + $0x50] sm:$0xff]  ;;  %v31_v8 = vld [vmem:[%s304_s1 + $0x48] sm:$0xff]  ;;  %v30_v9 = vld [vmem:[%s304_s1 + $0x40] sm:$0xff] }
   0x4   :  { %54 = vmatpush1.msra.mxu0 %v36_v2  ;;  %v29_v10 = vld [vmem:[%s304_s1 + $0x38] sm:$0xff]  ;;  %v28_v11 = vld [vmem:[%s304_s1 + $0x30] sm:$0xff]  ;;  %v27_v12 = vld [vmem:[%s304_s1 + $0x28] sm:$0xff] }
   0x5   :  { %55 = vmatprep.subr.mxu0 %v197_v0  ;;  %v26_v13 = vld [vmem:[%s304_s1 + $0x20] sm:$0xff]  ;;  %v25_v14 = vld [vmem:[%s304_s1 + $0x18] sm:$0xff]  ;;  %v24_v15 = vld [vmem:[%s304_s1 + $0x10] sm:$0xff] }
   0x6   :  { %56 = vmatpush1.msra.mxu0 %v35_v3  ;;  %v23_v16 = vld [vmem:[%s304_s1 + $0x8] sm:$0xff]  ;;  %v22_v17 = vld [vmem:[%s304_s1] sm:$0xff] }
   0x7   :  { %57 = vmatprep.subr.mxu0 %v197_v0  ;;  %v39_v18 = vld [vmem:[%s304_s1 + $0x88] sm:$0xff]  ;;  %v38_v19 = vld [vmem:[%s304_s1 + $0x80] sm:$0xff] }
   0x8   :  { %58 = vmatpush1.msra.mxu0 %v34_v4  ;;  %v20_v20 = vld [vmem:[%s305_s0] sm:$0xff] }
   0x9   :  { %59 = vmatprep.subr.mxu0 %v197_v0  ;;  %v185_v21 = vld [vmem:[%s306_s2] ss:$0 sm:$0xff] }
   0xa   :  { %60 = vmatpush1.msra.mxu0 %v33_v5  ;;  %v187_v38 = vld [vmem:[%s307_s3] ss:$0 sm:$0xff] }
   0xb   :  { %61 = vmatprep.subr.mxu0 %v197_v0  ;;  %v188_v40 = vld [vmem:[%s308_s4] ss:$0 sm:$0xff] }
   0xc   :  { %62 = vmatpush1.msra.mxu0 %v32_v7 }
   0xd   :  { %63 = vmatprep.subr.mxu0 %v197_v0 }
   0xe   :  { %64 = vmatpush1.msra.mxu0 %v31_v8 }
   0xf   :  { %65 = vmatprep.subr.mxu0 %v197_v0 }
  0x10   :  { %66 = vmatpush1.msra.mxu0 %v30_v9 }
  0x11   :  { %67 = vmatprep.subr.mxu0 %v197_v0 }
  0x12   :  { %68 = vmatpush1.msra.mxu0 %v29_v10 }
  0x13   :  { %69 = vmatprep.subr.mxu0 %v197_v0 }
  0x14   :  { %70 = vmatpush1.msra.mxu0 %v28_v11 }
  0x15   :  { %71 = vmatprep.subr.mxu0 %v197_v0 }
  0x16   :  { %72 = vmatpush1.msra.mxu0 %v27_v12 }
  0x17   :  { %73 = vmatprep.subr.mxu0 %v197_v0 }
  0x18   :  { %74 = vmatpush1.msra.mxu0 %v26_v13 }
  0x19   :  { %75 = vmatprep.subr.mxu0 %v197_v0 }
  0x1a   :  { %76 = vmatpush1.msra.mxu0 %v25_v14 }
  0x1b   :  { %77 = vmatprep.subr.mxu0 %v197_v0 }
  0x1c   :  { %78 = vmatpush1.msra.mxu0 %v24_v15 }
  0x1d   :  { %79 = vmatprep.subr.mxu0 %v197_v0 }
  0x1e   :  { %80 = vmatpush1.msra.mxu0 %v23_v16 }
  0x1f   :  { %81 = vmatprep.subr.mxu0 %v197_v0 }
  0x20   :  { %82 = vmatpush1.msra.mxu0 %v22_v17 }
  0x21   :  { %111 = vmatprep.subr.mxu0 %v197_v0 }
  0x22   :  { %112 = vmatpush2.msra.mxu0 %v39_v18 }
  0x23   :  { %113 = vmatprep.subr.mxu0 %v197_v0 }
  0x24   :  { %114 = vmatpush2.msra.mxu0 %v38_v19 }
  0x25   :  { %116 = vmatmul.mubr.f32.vlgmr.msra.gmra.mxu0 %v20_v20 }
  0xe5   :  { %v117_v22 = vpop.f32.mrf.mxu0 }
  0xe6   :  { %v118_v23 = vadd.f32 %v185_v21, %v117_v22 }
  0xe7   :  { %v119_v24 = vpop.f32.mrf.mxu0 }
  0xe8   :  { %v122_v25 = vsel %vm121_vm1, %v118_v23, 0.0  ;;  %v126_v26 = vmul.f32 %v118_v23, %v118_v23 }
  0xe9   :  { %123 = vadd.xlane.f32.xlu0 %v122_v25 }
  0xea   :  { %v127_v27 = vsel %vm121_vm1, %v126_v26, 0.0 }
  0xed   :  { %128 = vadd.xlane.f32.xlu0 %v127_v27 }
 0x172   :  { %v124_v28 = vpop.xlane.xlu0 %123 }
 0x173   :  { %v125_v29 = vmul.f32 0.03125, %v124_v28 }
 0x175   :  { %v131_v31 = vmul.f32 %v125_v29, %v125_v29  ;;  %v134_v36 = vsub.f32 %v118_v23, %v125_v29 }
 0x176   :  { %v129_v30 = vpop.xlane.xlu0 %128 }
 0x177   :  { %v130_v32 = vmul.f32 0.03125, %v129_v30 }
 0x179   :  { %v132_v33 = vsub.f32 %v130_v32, %v131_v31 }
 0x17b   :  { %v133_v34 = vmax.f32 %v132_v33, 0.0 }
 0x17d   :  { %v135_v35 = vadd.f32 1e-06, %v133_v34 }
 0x17f   :  { %191 = vrsqrt.f32 %v135_v35 }
 0x18c   :  { %v192_v37 = vpop.eup %191 }
 0x18d   :  { %v137_v39 = vmul.f32 %v192_v37, %v134_v36 }
 0x18f   :  { %v145_v41 = vmul.f32 %v187_v38, %v137_v39 }
 0x191   :  { %v153_v42 = vadd.f32 %v188_v40, %v145_v41 }
 0x193   :  { %v155_v43 = vmul.f32 0.70710677, %v153_v42  ;;  %v154_v2 = vmul.f32 0.5, %v153_v42 }
 0x195   :  { %v158_v44 = vand.u32 2147483647, %v155_v43  ;;  %vm156_vm2 = vcmp.ge.f32.partialorder %v155_v43, 0.0 }
 0x196   :  { %v157_v0 = vsel %vm156_vm2, 1.0, %v198_v63 }
 0x197   :  { %v159_v45 = vmul.f32 0.3275911, %v158_v44  ;;  %v171_v47 = vsub.f32 0.0, %v158_v44 }
 0x199   :  { %v160_v46 = vadd.f32 1.0, %v159_v45  ;;  %v172_v48 = vmul.f32 %v171_v47, %v158_v44 }
 0x19b   :  { %193 = vrcp.f32 %v160_v46  ;;  %v173_v51 = vmul.f32 1.442695, %v172_v48 }
 0x19d   :  { %195 = vpow2.f32 %v173_v51 }
 0x1a8   :  { %v194_v49 = vpop.eup %193 }
 0x1a9   :  { %v162_v50 = vmul.f32 1.0614054, %v194_v49 }
 0x1aa   :  { %v196_v60 = vpop.eup %195 }
 0x1ab   :  { %v163_v52 = vadd.f32 -1.4531521, %v162_v50 }
 0x1ad   :  { %v164_v53 = vmul.f32 %v194_v49, %v163_v52 }
 0x1af   :  { %v165_v54 = vadd.f32 1.4214138, %v164_v53 }
 0x1b1   :  { %v166_v55 = vmul.f32 %v194_v49, %v165_v54 }
 0x1b3   :  { %v167_v56 = vadd.f32 -0.28449672, %v166_v55 }
 0x1b5   :  { %v168_v57 = vmul.f32 %v194_v49, %v167_v56 }
 0x1b7   :  { %v169_v58 = vadd.f32 0.2548296, %v168_v57 }
 0x1b9   :  { %v170_v59 = vmul.f32 %v194_v49, %v169_v58 }
 0x1bb   :  { %v175_v61 = vmul.f32 %v196_v60, %v170_v59 }
 0x1bd   :  { %v176_v62 = vsub.f32 1.0, %v175_v61 }
 0x1bf   :  { %v177_v1 = vmul.f32 %v176_v62, %v157_v0 }
 0x1c1   :  { %v178_v3 = vadd.f32 1.0, %v177_v1 }
 0x1c3   :  { %v179_v4 = vmul.f32 %v178_v3, %v154_v2 }
 0x1c5   :  { %180 = vst.msk [vmem:[%s309_s5] sm:$0xff] %vm121_vm1, %v179_v4 }

// kernel: conv_block2_forward.4
= control target key start
LH: loop header
LB: loop body
LE: loop exit
PB: predicated region body
PF: predicated region fallthrough
CT: control target
= control target key end

     0   :  { %vm96_vm0 = vcmask 1042432   ;;  %vm47_vm1 = vcmask 220160   ;;  %vm245_vm2 = vcmask 64512   ;;  %s1846_s1 = inlined_call_operand.vmem [shape: f32[27,8], index: 1, kind: input, shape index: {}]   ;;  %s1847_s0 = inlined_call_operand.vmem [shape: f32[128,27], index: 0, kind: input, shape index: {}]   ;;  %s1848_s2 = inlined_call_operand.vmem [shape: f32[1,8], index: 2, kind: input, shape index: {}]   ;;  %s1849_s3 = inlined_call_operand.vmem [shape: f32[1,8], index: 3, kind: input, shape index: {}]   ;;  %s1850_s4 = inlined_call_operand.vmem [shape: f32[1,8], index: 4, kind: input, shape index: {}]   ;;  %s1851_s5 = inlined_call_operand.vmem [shape: f32[128,8], index: 5, kind: output, shape index: {}]  }
   0x1   :  { %v39_v0 = vld [vmem:[%s1846_s1 + $0x18] sm:$0x7]  ;;  %v38_v1 = vld [vmem:[%s1846_s1 + $0x10] sm:$0xff]  ;;  %v37_v2 = vld [vmem:[%s1846_s1 + $0x8] sm:$0xff] }
   0x2   :  { %1024 = vmatprep.subr.msk.mxu0 %vm96_vm0, %v39_v0  ;;  %1056 = vmatprep.subr.msk.mxu1 %vm96_vm0, %v39_v0  ;;  %v36_v3 = vld [vmem:[%s1846_s1] sm:$0xff]  ;;  %v21_v6 = vld [vmem:[%s1847_s0 + $0x8] sm:$0xff]  ;;  %v22_v8 = vld [vmem:[%s1847_s0 + $0x10] sm:$0xff] }
   0x3   :  { %1025 = vmatpush3.msk.msra.mxu0 %vm96_vm0, %v39_v0  ;;  %1060 = vmatpush3.msk.msra.mxu1 %vm96_vm0, %v39_v0  ;;  %v20_v4 = vld [vmem:[%s1847_s0] sm:$0xff]  ;;  %v29_v7 = vld [vmem:[%s1847_s0 + $0x48] sm:$0xff]  ;;  %v30_v9 = vld [vmem:[%s1847_s0 + $0x50] sm:$0xff] }
   0x4   :  { %1026 = vmatprep.subr.mxu0 %v38_v1  ;;  %1057 = vmatprep.subr.mxu1 %v38_v1  ;;  %v28_v5 = vld [vmem:[%s1847_s0 + $0x40] sm:$0xff]  ;;  %v23_v10 = vld [vmem:[%s1847_s0 + $0x18] sm:$0xff]  ;;  %v25_v14 = vld [vmem:[%s1847_s0 + $0x28] sm:$0xff] }
   0x5   :  { %1027 = vmatpush3.msra.mxu0 %v38_v1  ;;  %1061 = vmatpush3.msra.mxu1 %v38_v1  ;;  %v31_v11 = vld [vmem:[%s1847_s0 + $0x58] sm:$0xff]  ;;  %v24_v12 = vld [vmem:[%s1847_s0 + $0x20] sm:$0xff]  ;;  %v33_v15 = vld [vmem:[%s1847_s0 + $0x68] sm:$0xff] }
   0x6   :  { %1028 = vmatprep.subr.mxu0 %v37_v2  ;;  %1058 = vmatprep.subr.mxu1 %v37_v2  ;;  %v32_v13 = vld [vmem:[%s1847_s0 + $0x60] sm:$0xff]  ;;  %v26_v16 = vld [vmem:[%s1847_s0 + $0x30] sm:$0xff]  ;;  %v27_v18 = vld [vmem:[%s1847_s0 + $0x38] sm:$0xff] }
   0x7   :  { %1029 = vmatpush3.msra.mxu0 %v37_v2  ;;  %1062 = vmatpush3.msra.mxu1 %v37_v2  ;;  %v34_v17 = vld [vmem:[%s1847_s0 + $0x70] sm:$0xff]  ;;  %v35_v19 = vld [vmem:[%s1847_s0 + $0x78] sm:$0xff]  ;;  %v1273_v20 = vld [vmem:[%s1848_s2] ss:$0 sm:$0xff] }
   0x8   :  { %1030 = vmatprep.subr.mxu0 %v36_v3  ;;  %1059 = vmatprep.subr.mxu1 %v36_v3 }
   0x9   :  { %1031 = vmatpush3.msra.mxu0 %v36_v3  ;;  %1063 = vmatpush3.msra.mxu1 %v36_v3 }
   0xa   :  { %1032 = vmatprep.mubr.msk.f32.mxu0 %vm47_vm1, %v20_v4  ;;  %1044 = vmatprep.mubr.msk.f32.mxu1 %vm47_vm1, %v28_v5 }
   0xb   :  { %1033 = vmatmul.mubr.msk.f32.vlgmr.msra.gmra.mxu0 %vm47_vm1, %v21_v6  ;;  %1045 = vmatmul.mubr.msk.f32.vlgmr.msra.gmra.mxu1 %vm47_vm1, %v29_v7 }
   0xc   :  { %1035 = vmatprep.mubr.msk.f32.mxu0 %vm47_vm1, %v22_v8  ;;  %1047 = vmatprep.mubr.msk.f32.mxu1 %vm47_vm1, %v30_v9 }
   0xf   :  { %1036 = vmatmul.mubr.msk.f32.gmra.mxu0 %vm47_vm1, %v23_v10  ;;  %1048 = vmatmul.mubr.msk.f32.gmra.mxu1 %vm47_vm1, %v31_v11 }
  0x10   :  { %1038 = vmatprep.mubr.msk.f32.mxu0 %vm47_vm1, %v24_v12  ;;  %1050 = vmatprep.mubr.msk.f32.mxu1 %vm47_vm1, %v32_v13 }
  0x13   :  { %1039 = vmatmul.mubr.msk.f32.gmra.mxu0 %vm47_vm1, %v25_v14  ;;  %1051 = vmatmul.mubr.msk.f32.gmra.mxu1 %vm47_vm1, %v33_v15 }
  0x14   :  { %1041 = vmatprep.mubr.msk.f32.mxu0 %vm47_vm1, %v26_v16  ;;  %1053 = vmatprep.mubr.msk.f32.mxu1 %vm47_vm1, %v34_v17 }
  0x17   :  { %1042 = vmatmul.mubr.msk.f32.gmra.mxu0 %vm47_vm1, %v27_v18  ;;  %1054 = vmatmul.mubr.msk.f32.gmra.mxu1 %vm47_vm1, %v35_v19 }
  0xcb   :  { %v1034_v21 = vpop.f32.mrf.mxu0  ;;  %v1046_v22 = vpop.f32.mrf.mxu1 }
  0xcc   :  { %v1276_v23 = vadd.f32 %v1034_v21, %v1273_v20  ;;  %v1279_v24 = vadd.f32 %v1046_v22, %v1273_v20 }
  0xcd   :  { %v166_v25 = vpop.f32.mrf.mxu0  ;;  %v206_v29 = vpop.f32.mrf.mxu1 }
  0xce   :  { %v1282_v26 = vadd.f32 %v1273_v20, %v166_v25  ;;  %v273_v27 = vsel %vm245_vm2, %v1279_v24, 0.0  ;;  %v249_v28 = vsel %vm245_vm2, %v1276_v23, 0.0  ;;  %v311_v30 = vmul.f32 %v1276_v23, %v1276_v23 }
  0xcf   :  { %274 = vadd.xlane.f32.xlu1 %v273_v27  ;;  %250 = vadd.xlane.f32.xlu0 %v249_v28  ;;  %v1291_v31 = vadd.f32 %v1273_v20, %v206_v29  ;;  %v319_v34 = vmul.f32 %v1279_v24, %v1279_v24  ;;  %v1037_v35 = vpop.f32.mrf.mxu0  ;;  %v1049_v40 = vpop.f32.mrf.mxu1 }
  0xd0   :  { %v329_v32 = vsel %vm245_vm2, %v311_v30, 0.0  ;;  %v246_v33 = vsel %vm245_vm2, %v1282_v26, 0.0  ;;  %v1299_v36 = vadd.f32 %v1037_v35, %v1273_v20  ;;  %v310_v39 = vmul.f32 %v1282_v26, %v1282_v26 }
  0xd1   :  { %v353_v37 = vsel %vm245_vm2, %v319_v34, 0.0  ;;  %v270_v38 = vsel %vm245_vm2, %v1291_v31, 0.0  ;;  %v1307_v41 = vadd.f32 %v1049_v40, %v1273_v20  ;;  %v318_v44 = vmul.f32 %v1291_v31, %v1291_v31  ;;  %v176_v45 = vpop.f32.mrf.mxu0  ;;  %v216_v46 = vpop.f32.mrf.mxu1 }
  0xd2   :  { %v255_v42 = vsel %vm245_vm2, %v1299_v36, 0.0  ;;  %v326_v43 = vsel %vm245_vm2, %v310_v39, 0.0  ;;  %v1317_v48 = vadd.f32 %v1273_v20, %v176_v45  ;;  %v1320_v49 = vadd.f32 %v1273_v20, %v216_v46 }
  0xd3   :  { %330 = vadd.xlane.f32.xlu1 %v329_v32  ;;  %247 = vadd.xlane.f32.xlu0 %v246_v33  ;;  %v279_v47 = vsel %vm245_vm2, %v1307_v41, 0.0  ;;  %v350_v50 = vsel %vm245_vm2, %v318_v44, 0.0  ;;  %v313_v53 = vmul.f32 %v1299_v36, %v1299_v36  ;;  %v1040_v55 = vpop.f32.mrf.mxu0  ;;  %v321_v58 = vmul.f32 %v1307_v41, %v1307_v41  ;;  %v1052_v61 = vpop.f32.mrf.mxu1 }
  0xd4   :  { %v252_v51 = vsel %vm245_vm2, %v1317_v48, 0.0  ;;  %v276_v52 = vsel %vm245_vm2, %v1320_v49, 0.0  ;;  %v312_v54 = vmul.f32 %v1317_v48, %v1317_v48  ;;  %v320_v59 = vmul.f32 %v1320_v49, %v1320_v49 }
  0xd5   :  { %v335_v56 = vsel %vm245_vm2, %v313_v53, 0.0  ;;  %v186_v60 = vpop.f32.mrf.mxu0  ;;  %v1338_v62 = vadd.f32 %v1040_v55, %v1273_v20  ;;  %v359_v0 = vsel %vm245_vm2, %v321_v58, 0.0  ;;  %v226_v2 = vpop.f32.mrf.mxu1  ;;  %v1346_v3 = vadd.f32 %v1052_v61, %v1273_v20 }
  0xd6   :  { %v332_v57 = vsel %vm245_vm2, %v312_v54, 0.0  ;;  %v1341_v63 = vadd.f32 %v1273_v20, %v186_v60  ;;  %v356_v1 = vsel %vm245_vm2, %v320_v59, 0.0  ;;  %v1349_v4 = vadd.f32 %v1273_v20, %v226_v2 }
  0xd7   :  { %354 = vadd.xlane.f32.xlu1 %v353_v37  ;;  %271 = vadd.xlane.f32.xlu0 %v270_v38  ;;  %v261_v5 = vsel %vm245_vm2, %v1338_v62, 0.0  ;;  %v285_v7 = vsel %vm245_vm2, %v1346_v3, 0.0  ;;  %v315_v9 = vmul.f32 %v1338_v62, %v1338_v62  ;;  %v1043_v11 = vpop.f32.mrf.mxu0  ;;  %v323_v14 = vmul.f32 %v1346_v3, %v1346_v3  ;;  %v1055_v17 = vpop.f32.mrf.mxu1 }
  0xd8   :  { %v258_v6 = vsel %vm245_vm2, %v1341_v63, 0.0  ;;  %v282_v8 = vsel %vm245_vm2, %v1349_v4, 0.0  ;;  %v314_v10 = vmul.f32 %v1341_v63, %v1341_v63  ;;  %v322_v15 = vmul.f32 %v1349_v4, %v1349_v4 }
  0xd9   :  { %v341_v12 = vsel %vm245_vm2, %v315_v9, 0.0  ;;  %v196_v16 = vpop.f32.mrf.mxu0  ;;  %v1370_v18 = vadd.f32 %v1043_v11, %v1273_v20  ;;  %v365_v21 = vsel %vm245_vm2, %v323_v14, 0.0  ;;  %v236_v25 = vpop.f32.mrf.mxu1  ;;  %v1378_v27 = vadd.f32 %v1055_v17, %v1273_v20 }
  0xda   :  { %v338_v13 = vsel %vm245_vm2, %v314_v10, 0.0  ;;  %v1373_v19 = vadd.f32 %v1273_v20, %v196_v16  ;;  %v362_v22 = vsel %vm245_vm2, %v322_v15, 0.0  ;;  %v1381_v28 = vadd.f32 %v1273_v20, %v236_v25 }
  0xdb   :  { %256 = vadd.xlane.f32.xlu1 %v255_v42  ;;  %327 = vadd.xlane.f32.xlu0 %v326_v43  ;;  %v267_v29 = vsel %vm245_vm2, %v1370_v18, 0.0  ;;  %v291_v32 = vsel %vm245_vm2, %v1378_v27, 0.0  ;;  %v317_v34 = vmul.f32 %v1370_v18, %v1370_v18  ;;  %v325_v38 = vmul.f32 %v1378_v27, %v1378_v27 }
  0xdc   :  { %v264_v30 = vsel %vm245_vm2, %v1373_v19, 0.0  ;;  %v288_v33 = vsel %vm245_vm2, %v1381_v28, 0.0  ;;  %v316_v20 = vmul.f32 %v1373_v19, %v1373_v19  ;;  %v324_v39 = vmul.f32 %v1381_v28, %v1381_v28 }
  0xdd   :  { %v347_v35 = vsel %vm245_vm2, %v317_v34, 0.0  ;;  %v371_v40 = vsel %vm245_vm2, %v325_v38, 0.0 }
  0xde   :  { %v344_v37 = vsel %vm245_vm2, %v316_v20, 0.0  ;;  %v368_v42 = vsel %vm245_vm2, %v324_v39, 0.0 }
  0xdf   :  { %280 = vadd.xlane.f32.xlu1 %v279_v47  ;;  %351 = vadd.xlane.f32.xlu0 %v350_v50 }
  0xe3   :  { %253 = vadd.xlane.f32.xlu1 %v252_v51  ;;  %277 = vadd.xlane.f32.xlu0 %v276_v52 }
  0xe7   :  { %336 = vadd.xlane.f32.xlu1 %v335_v56  ;;  %333 = vadd.xlane.f32.xlu0 %v332_v57 }
  0xeb   :  { %360 = vadd.xlane.f32.xlu1 %v359_v0  ;;  %357 = vadd.xlane.f32.xlu0 %v356_v1 }
  0xef   :  { %262 = vadd.xlane.f32.xlu1 %v261_v5  ;;  %259 = vadd.xlane.f32.xlu0 %v258_v6 }
  0xf3   :  { %286 = vadd.xlane.f32.xlu1 %v285_v7  ;;  %283 = vadd.xlane.f32.xlu0 %v282_v8 }
  0xf7   :  { %342 = vadd.xlane.f32.xlu1 %v341_v12  ;;  %339 = vadd.xlane.f32.xlu0 %v338_v13 }
  0xfb   :  { %366 = vadd.xlane.f32.xlu1 %v365_v21  ;;  %363 = vadd.xlane.f32.xlu0 %v362_v22 }
  0xff   :  { %268 = vadd.xlane.f32.xlu1 %v267_v29  ;;  %265 = vadd.xlane.f32.xlu0 %v264_v30 }
 0x103   :  { %292 = vadd.xlane.f32.xlu1 %v291_v32  ;;  %289 = vadd.xlane.f32.xlu0 %v288_v33 }
 0x107   :  { %348 = vadd.xlane.f32.xlu1 %v347_v35  ;;  %345 = vadd.xlane.f32.xlu0 %v344_v37 }
 0x10b   :  { %372 = vadd.xlane.f32.xlu1 %v371_v40  ;;  %369 = vadd.xlane.f32.xlu0 %v368_v42  ;;  %v1427_v40 = vld [vmem:[%s1849_s3] ss:$0 sm:$0xff] }
 0x158   :  { %v275_v43 = vpop.xlane.xlu1 %274  ;;  %v251_v44 = vpop.xlane.xlu0 %250 }
 0x159   :  { %v295_v45 = vmul.f32 0.125, %v251_v44  ;;  %v1403_v50 = vmul.f32 0.125, %v275_v43 }
 0x15b   :  { %v391_v51 = vmul.f32 %v295_v45, %v295_v45  ;;  %v399_v57 = vmul.f32 %v1403_v50, %v1403_v50  ;;  %v439_v32 = vsub.f32 %v1276_v23, %v295_v45 }
 0x15c   :  { %v331_v46 = vpop.xlane.xlu1 %330  ;;  %v248_v47 = vpop.xlane.xlu0 %247 }
 0x15d   :  { %v375_v52 = vmul.f32 0.125, %v331_v46  ;;  %v1405_v54 = vmul.f32 0.125, %v248_v47  ;;  %v447_v46 = vsub.f32 %v1279_v24, %v1403_v50  ;;  %v1438_v47 = vld [vmem:[%s1850_s4] ss:$0 sm:$0xff] }
 0x15f   :  { %v407_v53 = vsub.f32 %v375_v52, %v391_v51  ;;  %v390_v0 = vmul.f32 %v1405_v54, %v1405_v54 }
 0x160   :  { %v355_v55 = vpop.xlane.xlu1 %354  ;;  %v272_v56 = vpop.xlane.xlu0 %271 }
 0x161   :  { %v423_v58 = vmax.f32 %v407_v53, 0.0  ;;  %v383_v59 = vmul.f32 0.125, %v355_v55  ;;  %v1411_v6 = vmul.f32 0.125, %v272_v56 }
 0x163   :  { %v455_v60 = vadd.f32 1e-06, %v423_v58  ;;  %v415_v61 = vsub.f32 %v383_v59, %v399_v57  ;;  %v398_v12 = vmul.f32 %v1411_v6, %v1411_v6 }
 0x164   :  { %v257_v1 = vpop.xlane.xlu1 %256  ;;  %v328_v2 = vpop.xlane.xlu0 %327 }
 0x165   :  { %1065 = vrsqrt.f32 %v455_v60  ;;  %v431_v5 = vmax.f32 %v415_v61, 0.0  ;;  %v374_v7 = vmul.f32 0.125, %v328_v2  ;;  %v1415_v17 = vmul.f32 0.125, %v257_v1 }
 0x167   :  { %v463_v8 = vadd.f32 1e-06, %v431_v5  ;;  %v406_v9 = vsub.f32 %v374_v7, %v390_v0  ;;  %v393_v33 = vmul.f32 %v1415_v17, %v1415_v17 }
 0x168   :  { %v281_v10 = vpop.xlane.xlu1 %280  ;;  %v352_v11 = vpop.xlane.xlu0 %351 }
 0x169   :  { %1067 = vrsqrt.f32 %v463_v8  ;;  %v422_v13 = vmax.f32 %v406_v9, 0.0  ;;  %v382_v14 = vmul.f32 0.125, %v352_v11  ;;  %v1429_v42 = vmul.f32 0.125, %v281_v10 }
 0x16a   :  { %v438_v8 = vsub.f32 %v1282_v26, %v1405_v54 }
 0x16b   :  { %v454_v15 = vadd.f32 1e-06, %v422_v13  ;;  %v414_v16 = vsub.f32 %v382_v14, %v398_v12  ;;  %v401_v59 = vmul.f32 %v1429_v42, %v1429_v42 }
 0x16c   :  { %v254_v21 = vpop.xlane.xlu1 %253  ;;  %v278_v22 = vpop.xlane.xlu0 %277 }
 0x16d   :  { %1069 = vrsqrt.f32 %v454_v15  ;;  %v430_v25 = vmax.f32 %v414_v16, 0.0  ;;  %v1417_v29 = vmul.f32 0.125, %v254_v21  ;;  %v1431_v23 = vmul.f32 0.125, %v278_v22 }
 0x16f   :  { %v462_v30 = vadd.f32 1e-06, %v430_v25  ;;  %v392_v35 = vmul.f32 %v1417_v29, %v1417_v29  ;;  %v400_v60 = vmul.f32 %v1431_v23, %v1431_v23 }
 0x170   :  { %v337_v34 = vpop.xlane.xlu1 %336  ;;  %v334_v20 = vpop.xlane.xlu0 %333 }
 0x171   :  { %1071 = vrsqrt.f32 %v462_v30  ;;  %v377_v37 = vmul.f32 0.125, %v337_v34  ;;  %v376_v38 = vmul.f32 0.125, %v334_v20 }
 0x172   :  { %v1066_v39 = vpop.eup %1065 }
 0x173   :  { %v487_v43 = vmul.f32 %v1066_v39, %v439_v32  ;;  %v409_v44 = vsub.f32 %v377_v37, %v393_v33  ;;  %v408_v45 = vsub.f32 %v376_v38, %v392_v35  ;;  %v446_v32 = vsub.f32 %v1291_v31, %v1411_v6 }
 0x174   :  { %v361_v51 = vpop.xlane.xlu1 %360  ;;  %v358_v52 = vpop.xlane.xlu0 %357  ;;  %v441_v39 = vsub.f32 %v1299_v36, %v1415_v17  ;;  %v1852_v36 = vmov -1.0  }
 0x175   :  { %v510_v53 = vmul.f32 %v1427_v40, %v487_v43  ;;  %v425_v55 = vmax.f32 %v409_v44, 0.0  ;;  %v424_v56 = vmax.f32 %v408_v45, 0.0  ;;  %v385_v57 = vmul.f32 0.125, %v361_v51 }
 0x176   :  { %v1068_v58 = vpop.eup %1067  ;;  %v384_v24 = vmul.f32 0.125, %v358_v52 }
 0x177   :  { %v533_v50 = vadd.f32 %v1438_v47, %v510_v53  ;;  %v495_v61 = vmul.f32 %v1068_v58, %v447_v46  ;;  %v457_v0 = vadd.f32 1e-06, %v425_v55  ;;  %v456_v1 = vadd.f32 1e-06, %v424_v56 }
 0x178   :  { %v417_v2 = vsub.f32 %v385_v57, %v401_v59  ;;  %v416_v5 = vsub.f32 %v384_v24, %v400_v60  ;;  %v263_v37 = vpop.xlane.xlu1 %262  ;;  %v260_v51 = vpop.xlane.xlu0 %259  ;;  %v449_v53 = vsub.f32 %v1307_v41, %v1429_v42  ;;  %v440_v56 = vsub.f32 %v1317_v48, %v1417_v29 }
 0x179   :  { %v565_v7 = vmul.f32 0.70710677, %v533_v50  ;;  %v518_v9 = vmul.f32 %v1427_v40, %v495_v61  ;;  %1073 = vrsqrt.f32 %v457_v0  ;;  %v1457_v46 = vmul.f32 0.125, %v263_v37 }
 0x17a   :  { %v1070_v10 = vpop.eup %1069  ;;  %1075 = vrsqrt.f32 %v456_v1  ;;  %v433_v11 = vmax.f32 %v417_v2, 0.0  ;;  %v432_v12 = vmax.f32 %v416_v5, 0.0  ;;  %v1464_v57 = vmul.f32 0.5, %v533_v50 }
 0x17b   :  { %v613_v13 = vand.u32 2147483647, %v565_v7  ;;  %v541_v14 = vadd.f32 %v1438_v47, %v518_v9  ;;  %v486_v15 = vmul.f32 %v1070_v10, %v438_v8  ;;  %vm581_vm3 = vcmp.ge.f32.partialorder %v565_v7, 0.0 }
 0x17c   :  { %v465_v16 = vadd.f32 1e-06, %v433_v11  ;;  %v464_v21 = vadd.f32 1e-06, %v432_v12  ;;  %v1467_v17 = vsel %vm581_vm3, 1.0, %v1852_v36  ;;  %v448_v58 = vsub.f32 %v1320_v49, %v1431_v23  ;;  %v287_v9 = vpop.xlane.xlu1 %286 }
 0x17d   :  { %v629_v22 = vmul.f32 0.3275911, %v613_v13  ;;  %v573_v25 = vmul.f32 0.70710677, %v541_v14  ;;  %v509_v26 = vmul.f32 %v1427_v40, %v486_v15  ;;  %v821_v33 = vsub.f32 0.0, %v613_v13 }
 0x17e   :  { %v1072_v30 = vpop.eup %1071  ;;  %1077 = vrsqrt.f32 %v465_v16  ;;  %v1473_v41 = vmul.f32 0.125, %v260_v51  ;;  %v1477_v50 = vmul.f32 %v1457_v46, %v1457_v46  ;;  %v1479_v0 = vmul.f32 0.5, %v541_v14  ;;  %v284_v16 = vpop.xlane.xlu0 %283 }
 0x17f   :  { %v645_v54 = vadd.f32 1.0, %v629_v22  ;;  %v621_v34 = vand.u32 2147483647, %v573_v25  ;;  %v532_v20 = vadd.f32 %v1438_v47, %v509_v26  ;;  %v494_v35 = vmul.f32 %v1072_v30, %v446_v32 }
 0x180   :  { %1079 = vrsqrt.f32 %v464_v21  ;;  %v837_v6 = vmul.f32 %v821_v33, %v613_v13  ;;  %vm589_vm4 = vcmp.ge.f32.partialorder %v573_v25, 0.0  ;;  %v443_v23 = vsub.f32 %v1338_v62, %v1457_v46 }
 0x181   :  { %1081 = vrcp.f32 %v645_v54  ;;  %v637_v38 = vmul.f32 0.3275911, %v621_v34  ;;  %v564_v43 = vmul.f32 0.70710677, %v532_v20  ;;  %v517_v31 = vmul.f32 %v1427_v40, %v494_v35 }
 0x182   :  { %v829_v45 = vsub.f32 0.0, %v621_v34  ;;  %v854_v61 = vmul.f32 1.442695, %v837_v6  ;;  %v1485_v2 = vsel %vm589_vm4, 1.0, %v1852_v36  ;;  %v1487_v5 = vmul.f32 0.5, %v532_v20  ;;  %v343_v6 = vpop.xlane.xlu1 %342 }
 0x183   :  { %v653_v44 = vadd.f32 1.0, %v637_v38  ;;  %v612_v52 = vand.u32 2147483647, %v564_v43  ;;  %v540_v55 = vadd.f32 %v1438_v47, %v517_v31  ;;  %vm580_vm5 = vcmp.ge.f32.partialorder %v564_v43, 0.0 }
 0x184   :  { %v845_v48 = vmul.f32 %v829_v45, %v621_v34  ;;  %v1492_v11 = vmul.f32 %v1473_v41, %v1473_v41  ;;  %v442_v25 = vsub.f32 %v1341_v63, %v1473_v41  ;;  %v1500_v30 = vmul.f32 0.125, %v287_v9 }
 0x185   :  { %1083 = vrcp.f32 %v653_v44  ;;  %v628_v60 = vmul.f32 0.3275911, %v612_v52  ;;  %v1471_v24 = vmul.f32 0.70710677, %v540_v55  ;;  %v1503_v26 = vsel %vm580_vm5, 1.0, %v1852_v36 }
 0x186   :  { %v1074_v59 = vpop.eup %1073  ;;  %v870_v13 = vmul.f32 1.442695, %v845_v48  ;;  %v820_v54 = vsub.f32 0.0, %v612_v52  ;;  %v1513_v35 = vmul.f32 0.5, %v540_v55  ;;  %v1516_v38 = vmul.f32 0.125, %v284_v16 }
 0x187   :  { %v1076_v42 = vpop.eup %1075  ;;  %v489_v29 = vmul.f32 %v1074_v59, %v441_v39  ;;  %v644_v1 = vadd.f32 1.0, %v628_v60  ;;  %v620_v49 = vand.u32 2147483647, %v1471_v24  ;;  %vm588_vm6 = vcmp.ge.f32.partialorder %v1471_v24, 0.0 }
 0x188   :  { %v488_v8 = vmul.f32 %v1076_v42, %v440_v56  ;;  %v836_v56 = vmul.f32 %v820_v54, %v612_v52  ;;  %v379_v48 = vmul.f32 0.125, %v343_v6  ;;  %v1541_v52 = vsel %vm588_vm6, 1.0, %v1852_v36 }
 0x189   :  { %v512_v7 = vmul.f32 %v1427_v40, %v489_v29  ;;  %1085 = vrcp.f32 %v644_v1  ;;  %v636_v10 = vmul.f32 0.3275911, %v620_v49  ;;  %v828_v44 = vsub.f32 0.0, %v620_v49 }
 0x18a   :  { %1087 = vpow2.f32 %v854_v61  ;;  %v511_v15 = vmul.f32 %v1427_v40, %v488_v8 }
 0x18b   :  { %v1078_v12 = vpop.eup %1077  ;;  %v1495_v14 = vadd.f32 %v1438_v47, %v512_v7  ;;  %v652_v21 = vadd.f32 1.0, %v636_v10  ;;  %v844_v24 = vmul.f32 %v828_v44, %v620_v49 }
 0x18c   :  { %v497_v22 = vmul.f32 %v1078_v12, %v449_v53  ;;  %v1509_v34 = vadd.f32 %v1438_v47, %v511_v15  ;;  %v1528_v53 = vmul.f32 %v1500_v30, %v1500_v30  ;;  %v852_v15 = vmul.f32 1.442695, %v836_v56 }
 0x18d   :  { %v1080_v32 = vpop.eup %1079  ;;  %v1506_v33 = vmul.f32 0.70710677, %v1495_v14  ;;  %1089 = vrcp.f32 %v652_v21 }
 0x18e   :  { %v1511_v20 = vpop.eup %1081  ;;  %v520_v37 = vmul.f32 %v1427_v40, %v497_v22  ;;  %1091 = vpow2.f32 %v870_v13  ;;  %v496_v31 = vmul.f32 %v1080_v32, %v448_v58  ;;  %v1521_v45 = vmul.f32 0.70710677, %v1509_v34 }
 0x18f   :  { %v677_v39 = vmul.f32 1.0614054, %v1511_v20  ;;  %v615_v43 = vand.u32 2147483647, %v1506_v33  ;;  %v411_v32 = vsub.f32 %v379_v48, %v1477_v50  ;;  %v1555_v50 = vmul.f32 %v1516_v38, %v1516_v38 }
 0x190   :  { %v1524_v51 = vadd.f32 %v1438_v47, %v520_v37  ;;  %v614_v42 = vand.u32 2147483647, %v1521_v45  ;;  %v519_v8 = vmul.f32 %v1427_v40, %v496_v31  ;;  %vm583_vm7 = vcmp.ge.f32.partialorder %v1506_v33, 0.0 }
 0x191   :  { %v693_v55 = vadd.f32 -1.4531521, %v677_v39  ;;  %v631_v59 = vmul.f32 0.3275911, %v615_v43  ;;  %v823_v58 = vsub.f32 0.0, %v615_v43  ;;  %vm582_vm8 = vcmp.ge.f32.partialorder %v1521_v45, 0.0 }
 0x192   :  { %v1531_v60 = vpop.eup %1083  ;;  %v1535_v61 = vmul.f32 0.70710677, %v1524_v51  ;;  %v630_v9 = vmul.f32 0.3275911, %v614_v42  ;;  %v822_v10 = vsub.f32 0.0, %v614_v42  ;;  %v1550_v49 = vadd.f32 %v1438_v47, %v519_v8 }
 0x193   :  { %v709_v29 = vmul.f32 %v1511_v20, %v693_v55  ;;  %v685_v1 = vmul.f32 1.0614054, %v1531_v60  ;;  %v647_v7 = vadd.f32 1.0, %v631_v59  ;;  %v839_v16 = vmul.f32 %v823_v58, %v615_v43 }
 0x194   :  { %v646_v21 = vadd.f32 1.0, %v630_v9  ;;  %v623_v22 = vand.u32 2147483647, %v1535_v61  ;;  %v838_v31 = vmul.f32 %v822_v10, %v614_v42  ;;  %v868_v55 = vmul.f32 1.442695, %v844_v24  ;;  %v340_v10 = vpop.xlane.xlu0 %339 }
 0x195   :  { %v725_v12 = vadd.f32 1.4214138, %v709_v29  ;;  %v701_v13 = vadd.f32 -1.4531521, %v685_v1  ;;  %1093 = vrcp.f32 %v647_v7  ;;  %v858_v29 = vmul.f32 1.442695, %v839_v16 }
 0x196   :  { %v1545_v54 = vpop.eup %1085  ;;  %1095 = vrcp.f32 %v646_v21  ;;  %v639_v43 = vmul.f32 0.3275911, %v623_v22  ;;  %v831_v58 = vsub.f32 0.0, %v623_v22  ;;  %v856_v24 = vmul.f32 1.442695, %v838_v31 }
 0x197   :  { %v741_v37 = vmul.f32 %v1511_v20, %v725_v12  ;;  %v717_v39 = vmul.f32 %v1531_v60, %v701_v13  ;;  %v1088_v6 = vpop.eup %1087  ;;  %v676_v44 = vmul.f32 1.0614054, %v1545_v54  ;;  %1097 = vpow2.f32 %v852_v15 }
 0x198   :  { %v655_v42 = vadd.f32 1.0, %v639_v43  ;;  %v1562_v9 = vmul.f32 0.70710677, %v1550_v49  ;;  %v427_v15 = vmax.f32 %v411_v32, 0.0  ;;  %vm591_vm9 = vcmp.ge.f32.partialorder %v1535_v61, 0.0 }
 0x199   :  { %v757_v56 = vadd.f32 -0.28449672, %v741_v37  ;;  %v733_v59 = vadd.f32 1.4214138, %v717_v39  ;;  %v692_v48 = vadd.f32 -1.4531521, %v676_v44  ;;  %v847_v39 = vmul.f32 %v831_v58, %v623_v22 }
 0x19a   :  { %v1557_v1 = vpop.eup %1089  ;;  %1099 = vrcp.f32 %v655_v42  ;;  %v622_v36 = vand.u32 2147483647, %v1562_v9  ;;  %v459_v32 = vadd.f32 1e-06, %v427_v15  ;;  %vm590_vm10 = vcmp.ge.f32.partialorder %v1562_v9, 0.0 }
 0x19b   :  { %v773_v7 = vmul.f32 %v1511_v20, %v757_v56  ;;  %v749_v8 = vmul.f32 %v1531_v60, %v733_v59  ;;  %v1092_v12 = vpop.eup %1091  ;;  %v708_v13 = vmul.f32 %v1545_v54, %v692_v48  ;;  %v684_v21 = vmul.f32 1.0614054, %v1557_v1 }
 0x19c   :  { %1101 = vpow2.f32 %v868_v55  ;;  %v378_v56 = vmul.f32 0.125, %v340_v10  ;;  %v874_v58 = vmul.f32 1.442695, %v847_v39 }
 0x19d   :  { %v789_v16 = vadd.f32 0.2548296, %v773_v7  ;;  %v765_v37 = vadd.f32 -0.28449672, %v749_v8  ;;  %v724_v44 = vadd.f32 1.4214138, %v708_v13  ;;  %1103 = vpow2.f32 %v858_v29 }
 0x19e   :  { %v700_v43 = vadd.f32 -1.4531521, %v684_v21  ;;  %1105 = vpow2.f32 %v856_v24  ;;  %v410_v7 = vsub.f32 %v378_v56, %v1492_v11  ;;  %v638_v8 = vmul.f32 0.3275911, %v622_v36 }
 0x19f   :  { %v805_v31 = vmul.f32 %v1511_v20, %v789_v16  ;;  %v781_v59 = vmul.f32 %v1531_v60, %v765_v37  ;;  %v740_v48 = vmul.f32 %v1545_v54, %v724_v44  ;;  %1107 = vrsqrt.f32 %v459_v32 }
 0x1a0   :  { %v716_v42 = vmul.f32 %v1557_v1, %v700_v43  ;;  %v426_v13 = vmax.f32 %v410_v7, 0.0  ;;  %v654_v37 = vadd.f32 1.0, %v638_v8 }
 0x1a1   :  { %v885_v55 = vmul.f32 %v1088_v6, %v805_v31  ;;  %v797_v22 = vadd.f32 0.2548296, %v781_v59  ;;  %v756_v10 = vadd.f32 -0.28449672, %v740_v48  ;;  %v830_v6 = vsub.f32 0.0, %v622_v36  ;;  %v367_v59 = vpop.xlane.xlu1 %366 }
 0x1a2   :  { %v1572_v29 = vpop.eup %1093  ;;  %v732_v20 = vadd.f32 1.4214138, %v716_v42  ;;  %v458_v44 = vadd.f32 1e-06, %v426_v13  ;;  %1109 = vrcp.f32 %v654_v37 }
 0x1a3   :  { %v901_v24 = vsub.f32 1.0, %v885_v55  ;;  %v813_v21 = vmul.f32 %v1531_v60, %v797_v22  ;;  %v679_v16 = vmul.f32 1.0614054, %v1572_v29  ;;  %v772_v15 = vmul.f32 %v1545_v54, %v756_v10  ;;  %v1578_v39 = vpop.eup %1095 }
 0x1a4   :  { %v748_v11 = vmul.f32 %v1557_v1, %v732_v20  ;;  %v678_v60 = vmul.f32 1.0614054, %v1578_v39  ;;  %1111 = vrsqrt.f32 %v458_v44  ;;  %v1098_v32 = vpop.eup %1097  ;;  %v364_v20 = vpop.xlane.xlu0 %363  ;;  %v846_v37 = vmul.f32 %v830_v6, %v622_v36 }
 0x1a5   :  { %v917_v43 = vmul.f32 %v901_v24, %v1467_v17  ;;  %v893_v56 = vmul.f32 %v1092_v12, %v813_v21  ;;  %v695_v31 = vadd.f32 -1.4531521, %v679_v16  ;;  %v788_v48 = vadd.f32 0.2548296, %v772_v15 }
 0x1a6   :  { %v764_v42 = vadd.f32 -0.28449672, %v748_v11  ;;  %1113 = vpow2.f32 %v874_v58  ;;  %v694_v17 = vadd.f32 -1.4531521, %v678_v60  ;;  %v387_v12 = vmul.f32 0.125, %v367_v59 }
 0x1a7   :  { %v933_v7 = vadd.f32 1.0, %v917_v43  ;;  %v909_v55 = vsub.f32 1.0, %v893_v56  ;;  %v711_v22 = vmul.f32 %v1572_v29, %v695_v31  ;;  %v804_v8 = vmul.f32 %v1545_v54, %v788_v48  ;;  %v1585_v13 = vpop.eup %1099 }
 0x1a8   :  { %v780_v10 = vmul.f32 %v1557_v1, %v764_v42  ;;  %v710_v54 = vmul.f32 %v1578_v39, %v694_v17  ;;  %v687_v58 = vmul.f32 1.0614054, %v1585_v13  ;;  %v419_v36 = vsub.f32 %v387_v12, %v1528_v53 }
 0x1a9   :  { %v949_v24 = vmul.f32 %v933_v7, %v1464_v57  ;;  %v925_v21 = vmul.f32 %v909_v55, %v1485_v2  ;;  %v727_v16 = vadd.f32 1.4214138, %v711_v22  ;;  %v1102_v15 = vpop.eup %1101  ;;  %v884_v11 = vmul.f32 %v1098_v32, %v804_v8 }
 0x1aa   :  { %v796_v44 = vadd.f32 0.2548296, %v780_v10  ;;  %v1104_v43 = vpop.eup %1103  ;;  %v386_v6 = vmul.f32 0.125, %v364_v20  ;;  %v726_v48 = vadd.f32 1.4214138, %v710_v54  ;;  %v435_v7 = vmax.f32 %v419_v36, 0.0 }
 0x1ab   :  { %965 = vst.msk [vmem:[%s1851_s5 + $0x8] sm:$0xff] %vm245_vm2, %v949_v24  ;;  %v941_v57 = vadd.f32 1.0, %v925_v21  ;;  %v743_v2 = vmul.f32 %v1572_v29, %v727_v16  ;;  %v1106_v56 = vpop.eup %1105  ;;  %v900_v31 = vsub.f32 1.0, %v884_v11  ;;  %v703_v42 = vadd.f32 -1.4531521, %v687_v58 }
 0x1ac   :  { %v812_v59 = vmul.f32 %v1557_v1, %v796_v44  ;;  %v418_v55 = vsub.f32 %v386_v6, %v1555_v50  ;;  %v742_v10 = vmul.f32 %v1578_v39, %v726_v48  ;;  %v1108_v17 = vpop.eup %1107  ;;  %v467_v12 = vadd.f32 1e-06, %v435_v7 }
 0x1ad   :  { %v957_v60 = vmul.f32 %v941_v57, %v1479_v0  ;;  %v759_v32 = vadd.f32 -0.28449672, %v743_v2  ;;  %v916_v22 = vmul.f32 %v900_v31, %v1503_v26  ;;  %v719_v53 = vmul.f32 %v1585_v13, %v703_v42 }
 0x1ae   :  { %v892_v8 = vmul.f32 %v1102_v15, %v812_v59  ;;  %v872_v0 = vmul.f32 1.442695, %v846_v37  ;;  %v434_v20 = vmax.f32 %v418_v55, 0.0  ;;  %v758_v21 = vadd.f32 -0.28449672, %v742_v10 }
 0x1af   :  { %973 = vst.msk [vmem:[%s1851_s5 + $0x48] sm:$0xff] %vm245_vm2, %v957_v60  ;;  %v775_v1 = vmul.f32 %v1572_v29, %v759_v32  ;;  %v932_v24 = vadd.f32 1.0, %v916_v22  ;;  %v735_v26 = vadd.f32 1.4214138, %v719_v53  ;;  %v491_v15 = vmul.f32 %v1108_v17, %v443_v23  ;;  %v1612_v44 = vpop.eup %1109 }
 0x1b0   :  { %v908_v50 = vsub.f32 1.0, %v892_v8  ;;  %1115 = vrsqrt.f32 %v467_v12  ;;  %v466_v11 = vadd.f32 1e-06, %v434_v20  ;;  %v774_v37 = vmul.f32 %v1578_v39, %v758_v21  ;;  %v266_v12 = vpop.xlane.xlu0 %265 }
 0x1b1   :  { %v791_v16 = vadd.f32 0.2548296, %v775_v1  ;;  %v948_v54 = vmul.f32 %v932_v24, %v1487_v5  ;;  %v751_v57 = vmul.f32 %v1585_v13, %v735_v26  ;;  %v1112_v2 = vpop.eup %1111  ;;  %v686_v6 = vmul.f32 1.0614054, %v1612_v44 }
 0x1b2   :  { %v924_v58 = vmul.f32 %v908_v50, %v1541_v52  ;;  %v514_v62 = vmul.f32 %v1427_v40, %v491_v15  ;;  %1117 = vrsqrt.f32 %v466_v11  ;;  %v790_v5 = vadd.f32 0.2548296, %v774_v37 }
 0x1b3   :  { %v807_v36 = vmul.f32 %v1572_v29, %v791_v16  ;;  %v1114_v46 = vpop.eup %1113  ;;  %964 = vst.msk [vmem:[%s1851_s5] sm:$0xff] %vm245_vm2, %v948_v54  ;;  %v767_v52 = vadd.f32 -0.28449672, %v751_v57  ;;  %v490_v31 = vmul.f32 %v1112_v2, %v442_v25  ;;  %v1854_v59 = vmov -1.0   ;;  %v269_v25 = vpop.xlane.xlu1 %268 }
 0x1b4   :  { %v940_v23 = vadd.f32 1.0, %v924_v58  ;;  %v599_v29 = vsel %vm583_vm7, 1.0, %v1854_v59  ;;  %v702_v42 = vadd.f32 -1.4531521, %v686_v6  ;;  %v1632_v60 = vadd.f32 %v1438_v47, %v514_v62 }
 0x1b5   :  { %v887_v48 = vmul.f32 %v1104_v43, %v807_v36  ;;  %v806_v7 = vmul.f32 %v1578_v39, %v790_v5  ;;  %v783_v55 = vmul.f32 %v1585_v13, %v767_v52  ;;  %v513_v22 = vmul.f32 %v1427_v40, %v490_v31 }
 0x1b6   :  { %v956_v32 = vmul.f32 %v940_v23, %v1513_v35  ;;  %v718_v63 = vmul.f32 %v1612_v44, %v702_v42  ;;  %1119 = vpow2.f32 %v872_v0  ;;  %v1640_v41 = vmul.f32 0.70710677, %v1632_v60 }
 0x1b7   :  { %v903_v8 = vsub.f32 1.0, %v887_v48  ;;  %v886_v33 = vmul.f32 %v1106_v56, %v806_v7  ;;  %v799_v35 = vadd.f32 0.2548296, %v783_v55  ;;  %v1648_v39 = vadd.f32 %v1438_v47, %v513_v22  ;;  %v293_v11 = vpop.xlane.xlu1 %292 }
 0x1b8   :  { %972 = vst.msk [vmem:[%s1851_s5 + $0x40] sm:$0xff] %vm245_vm2, %v956_v32  ;;  %v734_v10 = vadd.f32 1.4214138, %v718_v63  ;;  %v1651_v53 = vand.u32 2147483647, %v1640_v41  ;;  %v551_v17 = vmul.f32 0.5, %v1495_v14 }
 0x1b9   :  { %v919_v43 = vmul.f32 %v903_v8, %v599_v29  ;;  %v902_v1 = vsub.f32 1.0, %v886_v33  ;;  %v815_v0 = vmul.f32 %v1585_v13, %v799_v35  ;;  %v598_v24 = vsel %vm582_vm8, 1.0, %v1854_v59 }
 0x1ba   :  { %v750_v45 = vmul.f32 %v1612_v44, %v734_v10  ;;  %v633_v56 = vmul.f32 0.3275911, %v1651_v53  ;;  %v1660_v26 = vmul.f32 0.70710677, %v1648_v39  ;;  %v451_v13 = vsub.f32 %v1346_v3, %v1500_v30 }
 0x1bb   :  { %v935_v20 = vadd.f32 1.0, %v919_v43  ;;  %v918_v50 = vmul.f32 %v902_v1, %v598_v24  ;;  %v895_v21 = vmul.f32 %v1114_v46, %v815_v0  ;;  %v550_v58 = vmul.f32 0.5, %v1509_v34  ;;  %v290_v46 = vpop.xlane.xlu0 %289  ;;  %v349_v7 = vpop.xlane.xlu1 %348 }
 0x1bc   :  { %v766_v14 = vadd.f32 -0.28449672, %v750_v45  ;;  %v649_v15 = vadd.f32 1.0, %v633_v56  ;;  %v1666_v2 = vand.u32 2147483647, %v1660_v26  ;;  %v607_v61 = vsel %vm591_vm9, 1.0, %v1854_v59 }
 0x1bd   :  { %v951_v16 = vmul.f32 %v935_v20, %v551_v17  ;;  %v1116_v54 = vpop.eup %1115  ;;  %v934_v37 = vadd.f32 1.0, %v918_v50  ;;  %v911_v57 = vsub.f32 1.0, %v895_v21  ;;  %v450_v3 = vsub.f32 %v1349_v4, %v1516_v38 }
 0x1be   :  { %v782_v36 = vmul.f32 %v1612_v44, %v766_v14  ;;  %1121 = vrcp.f32 %v649_v15  ;;  %v632_v62 = vmul.f32 0.3275911, %v1666_v2  ;;  %v499_v5 = vmul.f32 %v1116_v54, %v451_v13 }
 0x1bf   :  { %967 = vst.msk [vmem:[%s1851_s5 + $0x18] sm:$0xff] %vm245_vm2, %v951_v16  ;;  %v1118_v30 = vpop.eup %1117  ;;  %v950_v34 = vmul.f32 %v934_v37, %v550_v58  ;;  %v927_v6 = vmul.f32 %v911_v57, %v607_v61  ;;  %v559_v31 = vmul.f32 0.5, %v1524_v51  ;;  %v1682_v4 = vmul.f32 0.125, %v269_v25  ;;  %v346_v35 = vpop.xlane.xlu0 %345 }
 0x1c0   :  { %v798_v23 = vadd.f32 0.2548296, %v782_v36  ;;  %v498_v52 = vmul.f32 %v1118_v30, %v450_v3  ;;  %v648_v48 = vadd.f32 1.0, %v632_v62  ;;  %v522_v42 = vmul.f32 %v1427_v40, %v499_v5  ;;  %v373_v36 = vpop.xlane.xlu1 %372 }
 0x1c1   :  { %966 = vst.msk [vmem:[%s1851_s5 + $0x10] sm:$0xff] %vm245_vm2, %v950_v34  ;;  %v943_v29 = vadd.f32 1.0, %v927_v6  ;;  %v825_v63 = vsub.f32 0.0, %v1651_v53  ;;  %v1701_v33 = vmul.f32 0.125, %v266_v12  ;;  %v381_v9 = vmul.f32 0.125, %v349_v7 }
 0x1c2   :  { %v814_v38 = vmul.f32 %v1612_v44, %v798_v23  ;;  %v521_v32 = vmul.f32 %v1427_v40, %v498_v52  ;;  %1123 = vrcp.f32 %v648_v48  ;;  %v1690_v51 = vadd.f32 %v1438_v47, %v522_v42 }
 0x1c3   :  { %v1120_v55 = vpop.eup %1119  ;;  %v959_v22 = vmul.f32 %v943_v29, %v559_v31  ;;  %v397_v44 = vmul.f32 %v1682_v4, %v1682_v4  ;;  %v606_v17 = vsel %vm590_vm10, 1.0, %v1854_v59  ;;  %v841_v24 = vmul.f32 %v825_v63, %v1651_v53  ;;  %v370_v62 = vpop.xlane.xlu0 %369 }
 0x1c4   :  { %v894_v8 = vmul.f32 %v1120_v55, %v814_v38  ;;  %v1693_v25 = vadd.f32 %v1438_v47, %v521_v32  ;;  %v1704_v10 = vmul.f32 0.70710677, %v1690_v51  ;;  %v380_v56 = vmul.f32 0.125, %v346_v35 }
 0x1c5   :  { %975 = vst.msk [vmem:[%s1851_s5 + $0x58] sm:$0xff] %vm245_vm2, %v959_v22  ;;  %v413_v0 = vsub.f32 %v381_v9, %v397_v44  ;;  %v824_v12 = vsub.f32 0.0, %v1666_v2  ;;  %v396_v21 = vmul.f32 %v1701_v33, %v1701_v33  ;;  %v558_v14 = vmul.f32 0.5, %v1550_v49 }
 0x1c6   :  { %v910_v43 = vsub.f32 1.0, %v894_v8  ;;  %v1708_v1 = vmul.f32 0.70710677, %v1693_v25  ;;  %v625_v45 = vand.u32 2147483647, %v1704_v10  ;;  %v1717_v54 = vmul.f32 0.125, %v293_v11 }
 0x1c7   :  { %v429_v16 = vmax.f32 %v413_v0, 0.0  ;;  %v1719_v53 = vmul.f32 0.125, %v290_v46  ;;  %v412_v61 = vsub.f32 %v380_v56, %v396_v21  ;;  %v862_v34 = vmul.f32 1.442695, %v841_v24 }
 0x1c8   :  { %v926_v20 = vmul.f32 %v910_v43, %v606_v17  ;;  %v624_v50 = vand.u32 2147483647, %v1708_v1  ;;  %v641_v15 = vmul.f32 0.3275911, %v625_v45  ;;  %v840_v23 = vmul.f32 %v824_v12, %v1666_v2 }
 0x1c9   :  { %v461_v57 = vadd.f32 1e-06, %v429_v16  ;;  %v428_v49 = vmax.f32 %v412_v61, 0.0  ;;  %v405_v46 = vmul.f32 %v1717_v54, %v1717_v54  ;;  %v389_v52 = vmul.f32 0.125, %v373_v36 }
 0x1ca   :  { %v942_v13 = vadd.f32 1.0, %v926_v20  ;;  %v640_v37 = vmul.f32 0.3275911, %v624_v50  ;;  %v657_v6 = vadd.f32 1.0, %v641_v15  ;;  %v404_v31 = vmul.f32 %v1719_v53, %v1719_v53 }
 0x1cb   :  { %v1122_v58 = vpop.eup %1121  ;;  %1125 = vrsqrt.f32 %v461_v57  ;;  %v460_v29 = vadd.f32 1e-06, %v428_v49  ;;  %v388_v2 = vmul.f32 0.125, %v370_v62  ;;  %v421_v42 = vsub.f32 %v389_v52, %v405_v46 }
 0x1cc   :  { %v958_v3 = vmul.f32 %v942_v13, %v558_v14  ;;  %v681_v30 = vmul.f32 1.0614054, %v1122_v58  ;;  %v656_v5 = vadd.f32 1.0, %v640_v37  ;;  %1127 = vrcp.f32 %v657_v6 }
 0x1cd   :  { %v860_v7 = vmul.f32 1.442695, %v840_v23  ;;  %v420_v55 = vsub.f32 %v388_v2, %v404_v31  ;;  %v437_v8 = vmax.f32 %v421_v42, 0.0  ;;  %v833_v9 = vsub.f32 0.0, %v625_v45 }
 0x1ce   :  { %974 = vst.msk [vmem:[%s1851_s5 + $0x50] sm:$0xff] %vm245_vm2, %v958_v3  ;;  %v697_v11 = vadd.f32 -1.4531521, %v681_v30  ;;  %1129 = vrcp.f32 %v656_v5  ;;  %v832_v0 = vsub.f32 0.0, %v624_v50  ;;  %v445_v13 = vsub.f32 %v1370_v18, %v1682_v4 }
 0x1cf   :  { %v1124_v48 = vpop.eup %1123  ;;  %1131 = vpow2.f32 %v862_v34  ;;  %v469_v35 = vadd.f32 1e-06, %v437_v8  ;;  %v436_v43 = vmax.f32 %v420_v55, 0.0  ;;  %v849_v12 = vmul.f32 %v833_v9, %v625_v45 }
 0x1d0   :  { %v713_v38 = vmul.f32 %v1122_v58, %v697_v11  ;;  %v680_v32 = vmul.f32 1.0614054, %v1124_v48  ;;  %1133 = vrsqrt.f32 %v460_v29  ;;  %v848_v14 = vmul.f32 %v832_v0, %v624_v50 }
 0x1d1   :  { %1135 = vpow2.f32 %v860_v7  ;;  %v468_v21 = vadd.f32 1e-06, %v436_v43  ;;  %vm585_vm11 = vcmp.ge.f32.partialorder %v1640_v41, 0.0  ;;  %v878_v34 = vmul.f32 1.442695, %v849_v12 }
 0x1d2   :  { %v729_v22 = vadd.f32 1.4214138, %v713_v38  ;;  %v696_v63 = vadd.f32 -1.4531521, %v680_v32  ;;  %1137 = vrsqrt.f32 %v469_v35  ;;  %v876_v18 = vmul.f32 1.442695, %v848_v14 }
 0x1d3   :  { %1139 = vrsqrt.f32 %v468_v21  ;;  %v444_v49 = vsub.f32 %v1373_v19, %v1701_v33  ;;  %vm584_vm12 = vcmp.ge.f32.partialorder %v1660_v26, 0.0  ;;  %v453_v12 = vsub.f32 %v1378_v27, %v1717_v54 }
 0x1d4   :  { %v745_v44 = vmul.f32 %v1122_v58, %v729_v22  ;;  %v712_v17 = vmul.f32 %v1124_v48, %v696_v63  ;;  %1141 = vpow2.f32 %v878_v34  ;;  %vm593_vm13 = vcmp.ge.f32.partialorder %v1704_v10, 0.0 }
 0x1d5   :  { %1143 = vpow2.f32 %v876_v18  ;;  %vm592_vm14 = vcmp.ge.f32.partialorder %v1708_v1, 0.0 }
 0x1d6   :  { %v761_v20 = vadd.f32 -0.28449672, %v745_v44  ;;  %v728_v24 = vadd.f32 1.4214138, %v712_v17  ;;  %v553_v44 = vmul.f32 0.5, %v1632_v60  ;;  %v600_v17 = vsel %vm584_vm12, 1.0, %v1854_v59 }
 0x1d7   :  { %v608_v1 = vsel %vm592_vm14, 1.0, %v1854_v59 }
 0x1d8   :  { %v777_v56 = vmul.f32 %v1122_v58, %v761_v20  ;;  %v744_v16 = vmul.f32 %v1124_v48, %v728_v24  ;;  %v1126_v15 = vpop.eup %1125 }
 0x1d9   :  { %v1732_v57 = vpop.eup %1127  ;;  %v493_v36 = vmul.f32 %v1126_v15, %v445_v13 }
 0x1da   :  { %v793_v37 = vadd.f32 0.2548296, %v777_v56  ;;  %v760_v61 = vadd.f32 -0.28449672, %v744_v16  ;;  %v689_v45 = vmul.f32 1.0614054, %v1732_v57 }
 0x1db   :  { %v1735_v3 = vpop.eup %1129  ;;  %v516_v4 = vmul.f32 %v1427_v40, %v493_v36  ;;  %v552_v36 = vmul.f32 0.5, %v1648_v39 }
 0x1dc   :  { %v809_v30 = vmul.f32 %v1122_v58, %v793_v37  ;;  %v1132_v6 = vpop.eup %1131  ;;  %v776_v50 = vmul.f32 %v1124_v48, %v760_v61  ;;  %v688_v62 = vmul.f32 1.0614054, %v1735_v3  ;;  %v705_v5 = vadd.f32 -1.4531521, %v689_v45 }
 0x1dd   :  { %v1134_v11 = vpop.eup %1133  ;;  %v601_v58 = vsel %vm585_vm11, 1.0, %v1854_v59  ;;  %v1746_v31 = vadd.f32 %v1438_v47, %v516_v4  ;;  %v452_v45 = vsub.f32 %v1381_v28, %v1719_v53 }
 0x1de   :  { %v889_v23 = vmul.f32 %v1132_v6, %v809_v30  ;;  %v792_v46 = vadd.f32 0.2548296, %v776_v50  ;;  %v704_v52 = vadd.f32 -1.4531521, %v688_v62  ;;  %v721_v2 = vmul.f32 %v1732_v57, %v705_v5  ;;  %v1136_v33 = vpop.eup %1135 }
 0x1df   :  { %v492_v38 = vmul.f32 %v1134_v11, %v444_v49  ;;  %v1751_v19 = vmul.f32 0.70710677, %v1746_v31  ;;  %v1138_v43 = vpop.eup %1137 }
 0x1e0   :  { %v905_v29 = vsub.f32 1.0, %v889_v23  ;;  %v808_v42 = vmul.f32 %v1124_v48, %v792_v46  ;;  %v720_v32 = vmul.f32 %v1735_v3, %v704_v52  ;;  %v737_v7 = vadd.f32 1.4214138, %v721_v2  ;;  %v1140_v61 = vpop.eup %1139 }
 0x1e1   :  { %v515_v55 = vmul.f32 %v1427_v40, %v492_v38  ;;  %v619_v63 = vand.u32 2147483647, %v1751_v19  ;;  %v501_v37 = vmul.f32 %v1138_v43, %v453_v12  ;;  %v500_v23 = vmul.f32 %v1140_v61, %v452_v45  ;;  %v1142_v5 = vpop.eup %1141 }
 0x1e2   :  { %v921_v41 = vmul.f32 %v905_v29, %v601_v58  ;;  %v888_v22 = vmul.f32 %v1136_v33, %v808_v42  ;;  %v736_v8 = vadd.f32 1.4214138, %v720_v32  ;;  %v753_v9 = vmul.f32 %v1732_v57, %v737_v7  ;;  %v1144_v28 = vpop.eup %1143 }
 0x1e3   :  { %v1759_v35 = vadd.f32 %v1438_v47, %v515_v55  ;;  %v635_v20 = vmul.f32 0.3275911, %v619_v63  ;;  %v524_v62 = vmul.f32 %v1427_v40, %v501_v37  ;;  %v1161_v40 = vld [vmem:[%s1849_s3] ss:$0 sm:$0xff]  ;;  %v827_v58 = vsub.f32 0.0, %v619_v63 }
 0x1e4   :  { %v937_v48 = vadd.f32 1.0, %v921_v41  ;;  %v904_v0 = vsub.f32 1.0, %v888_v22  ;;  %v752_v26 = vmul.f32 %v1735_v3, %v736_v8  ;;  %v769_v56 = vadd.f32 -0.28449672, %v753_v9 }
 0x1e5   :  { %v1766_v60 = vmul.f32 0.70710677, %v1759_v35  ;;  %v651_v14 = vadd.f32 1.0, %v635_v20  ;;  %v1786_v49 = vadd.f32 %v1438_v47, %v524_v62  ;;  %v1162_v47 = vld [vmem:[%s1850_s4] ss:$0 sm:$0xff]  ;;  %v609_v52 = vsel %vm593_vm13, 1.0, %v1854_v59 }
 0x1e6   :  { %v953_v24 = vmul.f32 %v937_v48, %v553_v44  ;;  %v920_v21 = vmul.f32 %v904_v0, %v600_v17  ;;  %v768_v16 = vadd.f32 -0.28449672, %v752_v26  ;;  %v785_v13 = vmul.f32 %v1732_v57, %v769_v56 }
 0x1e7   :  { %v618_v15 = vand.u32 2147483647, %v1766_v60  ;;  %1145 = vrcp.f32 %v651_v14  ;;  %v1794_v46 = vmul.f32 0.70710677, %v1786_v49  ;;  %v843_v33 = vmul.f32 %v827_v58, %v619_v63 }
 0x1e8   :  { %969 = vst.msk [vmem:[%s1851_s5 + $0x28] sm:$0xff] %vm245_vm2, %v953_v24  ;;  %v936_v27 = vadd.f32 1.0, %v920_v21  ;;  %v784_v54 = vmul.f32 %v1735_v3, %v768_v16  ;;  %v801_v30 = vadd.f32 0.2548296, %v785_v13  ;;  %v561_v7 = vmul.f32 0.5, %v1690_v51 }
 0x1e9   :  { %v634_v34 = vmul.f32 0.3275911, %v618_v15  ;;  %v627_v2 = vand.u32 2147483647, %v1794_v46  ;;  %v826_v22 = vsub.f32 0.0, %v618_v15  ;;  %v560_v44 = vmul.f32 0.5, %v1693_v25 }
 0x1ea   :  { %v952_v6 = vmul.f32 %v936_v27, %v552_v36  ;;  %v800_v50 = vadd.f32 0.2548296, %v784_v54  ;;  %v817_v18 = vmul.f32 %v1732_v57, %v801_v30  ;;  %v523_v57 = vmul.f32 %v1161_v40, %v500_v23 }
 0x1eb   :  { %v650_v4 = vadd.f32 1.0, %v634_v34  ;;  %v643_v41 = vmul.f32 0.3275911, %v627_v2  ;;  %v866_v24 = vmul.f32 1.442695, %v843_v33  ;;  %v842_v51 = vmul.f32 %v826_v22, %v618_v15 }
 0x1ec   :  { %968 = vst.msk [vmem:[%s1851_s5 + $0x20] sm:$0xff] %vm245_vm2, %v952_v6  ;;  %v816_v39 = vmul.f32 %v1735_v3, %v800_v50  ;;  %v897_v53 = vmul.f32 %v1142_v5, %v817_v18  ;;  %v1799_v10 = vadd.f32 %v1162_v47, %v523_v57  ;;  %v835_v13 = vsub.f32 0.0, %v627_v2 }
 0x1ed   :  { %1147 = vrcp.f32 %v650_v4  ;;  %v659_v9 = vadd.f32 1.0, %v643_v41  ;;  %v864_v16 = vmul.f32 1.442695, %v842_v51  ;;  %vm587_vm15 = vcmp.ge.f32.partialorder %v1751_v19, 0.0 }
 0x1ee   :  { %v896_v11 = vmul.f32 %v1144_v28, %v816_v39  ;;  %v913_v3 = vsub.f32 1.0, %v897_v53  ;;  %v1805_v42 = vmul.f32 0.70710677, %v1799_v10  ;;  %v851_v54 = vmul.f32 %v835_v13, %v627_v2 }
 0x1ef   :  { %1149 = vrcp.f32 %v659_v9  ;;  %vm586_vm0 = vcmp.ge.f32.partialorder %v1766_v60, 0.0  ;;  %v555_v19 = vmul.f32 0.5, %v1746_v31  ;;  %vm595_vm1 = vcmp.ge.f32.partialorder %v1794_v46, 0.0 }
 0x1f0   :  { %v912_v29 = vsub.f32 1.0, %v896_v11  ;;  %v929_v38 = vmul.f32 %v913_v3, %v609_v52  ;;  %v626_v8 = vand.u32 2147483647, %v1805_v42  ;;  %v882_v4 = vmul.f32 1.442695, %v851_v54 }
 0x1f1   :  { %vm594_vm3 = vcmp.ge.f32.partialorder %v1805_v42, 0.0 }
 0x1f2   :  { %v928_v32 = vmul.f32 %v912_v29, %v608_v1  ;;  %v945_v55 = vadd.f32 1.0, %v929_v38  ;;  %v642_v0 = vmul.f32 0.3275911, %v626_v8  ;;  %v834_v15 = vsub.f32 0.0, %v626_v8 }
 0x1f3   :  { %v603_v38 = vsel %vm587_vm15, 1.0, %v1854_v59  ;;  %v610_v46 = vsel %vm594_vm3, 1.0, %v1854_v59 }
 0x1f4   :  { %v944_v48 = vadd.f32 1.0, %v928_v32  ;;  %v1146_v43 = vpop.eup %1145  ;;  %v961_v17 = vmul.f32 %v945_v55, %v561_v7  ;;  %v658_v63 = vadd.f32 1.0, %v642_v0  ;;  %v850_v50 = vmul.f32 %v834_v15, %v626_v8 }
 0x1f5   :  { %v683_v20 = vmul.f32 1.0614054, %v1146_v43  ;;  %v563_v15 = vmul.f32 0.5, %v1786_v49 }
 0x1f6   :  { %v960_v26 = vmul.f32 %v944_v48, %v560_v44  ;;  %977 = vst.msk [vmem:[%s1851_s5 + $0x68] sm:$0xff] %vm245_vm2, %v961_v17  ;;  %1151 = vrcp.f32 %v658_v63  ;;  %v880_v11 = vmul.f32 1.442695, %v850_v50  ;;  %v602_v17 = vsel %vm586_vm0, 1.0, %v1854_v59 }
 0x1f7   :  { %v699_v25 = vadd.f32 -1.4531521, %v683_v20  ;;  %1153 = vpow2.f32 %v866_v24  ;;  %v554_v24 = vmul.f32 0.5, %v1759_v35 }
 0x1f8   :  { %976 = vst.msk [vmem:[%s1851_s5 + $0x60] sm:$0xff] %vm245_vm2, %v960_v26  ;;  %1155 = vpow2.f32 %v864_v16 }
 0x1f9   :  { %v715_v12 = vmul.f32 %v1146_v43, %v699_v25  ;;  %1157 = vpow2.f32 %v882_v4 }
 0x1fa   :  { %v1148_v56 = vpop.eup %1147  ;;  %1159 = vpow2.f32 %v880_v11 }
 0x1fb   :  { %v682_v21 = vmul.f32 1.0614054, %v1148_v56  ;;  %v731_v14 = vadd.f32 1.4214138, %v715_v12 }
 0x1fc   :  { %v1150_v34 = vpop.eup %1149 }
 0x1fd   :  { %v698_v37 = vadd.f32 -1.4531521, %v682_v21  ;;  %v747_v61 = vmul.f32 %v1146_v43, %v731_v14  ;;  %v691_v18 = vmul.f32 1.0614054, %v1150_v34 }
 0x1ff   :  { %v714_v36 = vmul.f32 %v1148_v56, %v698_v37  ;;  %v763_v27 = vadd.f32 -0.28449672, %v747_v61  ;;  %v707_v28 = vadd.f32 -1.4531521, %v691_v18  ;;  %v611_v37 = vsel %vm595_vm1, 1.0, %v1854_v59 }
 0x201   :  { %v730_v30 = vadd.f32 1.4214138, %v714_v36  ;;  %v779_v45 = vmul.f32 %v1146_v43, %v763_v27  ;;  %v723_v3 = vmul.f32 %v1150_v34, %v707_v28 }
 0x203   :  { %v746_v6 = vmul.f32 %v1148_v56, %v730_v30  ;;  %v795_v62 = vadd.f32 0.2548296, %v779_v45  ;;  %v1152_v5 = vpop.eup %1151  ;;  %v739_v2 = vadd.f32 1.4214138, %v723_v3  ;;  %v562_v45 = vmul.f32 0.5, %v1799_v10 }
 0x204   :  { %v1154_v53 = vpop.eup %1153  ;;  %v690_v57 = vmul.f32 1.0614054, %v1152_v5 }
 0x205   :  { %v762_v23 = vadd.f32 -0.28449672, %v746_v6  ;;  %v811_v39 = vmul.f32 %v1146_v43, %v795_v62  ;;  %v1156_v33 = vpop.eup %1155  ;;  %v755_v7 = vmul.f32 %v1150_v34, %v739_v2 }
 0x206   :  { %v706_v52 = vadd.f32 -1.4531521, %v690_v57  ;;  %v1158_v25 = vpop.eup %1157 }
 0x207   :  { %v778_v40 = vmul.f32 %v1148_v56, %v762_v23  ;;  %v891_v58 = vmul.f32 %v1154_v53, %v811_v39  ;;  %v771_v44 = vadd.f32 -0.28449672, %v755_v7  ;;  %v1160_v14 = vpop.eup %1159 }
 0x208   :  { %v722_v32 = vmul.f32 %v1152_v5, %v706_v52 }
 0x209   :  { %v794_v47 = vadd.f32 0.2548296, %v778_v40  ;;  %v907_v29 = vsub.f32 1.0, %v891_v58  ;;  %v787_v0 = vmul.f32 %v1150_v34, %v771_v44 }
 0x20a   :  { %v738_v22 = vadd.f32 1.4214138, %v722_v32 }
 0x20b   :  { %v810_v1 = vmul.f32 %v1148_v56, %v794_v47  ;;  %v923_v41 = vmul.f32 %v907_v29, %v603_v38  ;;  %v803_v60 = vadd.f32 0.2548296, %v787_v0 }
 0x20c   :  { %v754_v9 = vmul.f32 %v1152_v5, %v738_v22 }
 0x20d   :  { %v890_v55 = vmul.f32 %v1156_v33, %v810_v1  ;;  %v939_v8 = vadd.f32 1.0, %v923_v41  ;;  %v819_v63 = vmul.f32 %v1150_v34, %v803_v60 }
 0x20e   :  { %v770_v20 = vadd.f32 -0.28449672, %v754_v9 }
 0x20f   :  { %v906_v48 = vsub.f32 1.0, %v890_v55  ;;  %v955_v43 = vmul.f32 %v939_v8, %v555_v19  ;;  %v899_v21 = vmul.f32 %v1158_v25, %v819_v63 }
 0x210   :  { %v786_v31 = vmul.f32 %v1152_v5, %v770_v20 }
 0x211   :  { %v922_v26 = vmul.f32 %v906_v48, %v602_v17  ;;  %971 = vst.msk [vmem:[%s1851_s5 + $0x38] sm:$0xff] %vm245_vm2, %v955_v43  ;;  %v915_v13 = vsub.f32 1.0, %v899_v21 }
 0x212   :  { %v802_v12 = vadd.f32 0.2548296, %v786_v31 }
 0x213   :  { %v938_v51 = vadd.f32 1.0, %v922_v26  ;;  %v931_v61 = vmul.f32 %v915_v13, %v611_v37 }
 0x214   :  { %v818_v16 = vmul.f32 %v1152_v5, %v802_v12 }
 0x215   :  { %v954_v56 = vmul.f32 %v938_v51, %v554_v24  ;;  %v947_v27 = vadd.f32 1.0, %v931_v61 }
 0x216   :  { %v898_v35 = vmul.f32 %v1160_v14, %v818_v16 }
 0x217   :  { %970 = vst.msk [vmem:[%s1851_s5 + $0x30] sm:$0xff] %vm245_vm2, %v954_v56  ;;  %v963_v30 = vmul.f32 %v947_v27, %v563_v15 }
 0x218   :  { %v914_v36 = vsub.f32 1.0, %v898_v35 }
 0x219   :  { %979 = vst.msk [vmem:[%s1851_s5 + $0x78] sm:$0xff] %vm245_vm2, %v963_v30 }
 0x21a   :  { %v930_v54 = vmul.f32 %v914_v36, %v610_v46 }
 0x21c   :  { %v946_v34 = vadd.f32 1.0, %v930_v54 }
 0x21e   :  { %v962_v6 = vmul.f32 %v946_v34, %v562_v45 }
 0x220   :  { %978 = vst.msk [vmem:[%s1851_s5 + $0x70] sm:$0xff] %vm245_vm2, %v962_v6 }

// kernel: conv_block2_forward.7
= control target key start
LH: loop header
LB: loop body
LE: loop exit
PB: predicated region body
PF: predicated region fallthrough
CT: control target
= control target key end

     0   :  { %v586_v3 = vmov 0.0   ;;  %v587_v4 = vmov 1983009808   ;;  %v75_v6 = vlaneseq  ;;  %vm588_vm0 = vmmov 0   ;;  %s874_s1 = inlined_call_operand.vmem [shape: f32[288,64], index: 1, kind: input, shape index: {}]   ;;  %s875_s0 = inlined_call_operand.vmem [shape: f32[2,288], index: 0, kind: input, shape index: {}]   ;;  %s876_s2 = inlined_call_operand.vmem [shape: f32[1,64], index: 2, kind: input, shape index: {}]   ;;  %s877_s5 = inlined_call_operand.vmem [shape: f32[64,512], index: 5, kind: input, shape index: {}]   ;;  %s878_s3 = inlined_call_operand.vmem [shape: f32[1,64], index: 3, kind: input, shape index: {}]   ;;  %s879_s4 = inlined_call_operand.vmem [shape: f32[1,64], index: 4, kind: input, shape index: {}]   ;;  %s880_s6 = inlined_call_operand.vmem [shape: f32[1,512], index: 6, kind: input, shape index: {}]   ;;  %s881_s7 = inlined_call_operand.vmem [shape: f32[2,512], index: 7, kind: output, shape index: {}]  }
   0x1   :  { %v58_v0 = vld [vmem:[%s874_s1 + $0xf8] sm:$0xff]  ;;  %v57_v2 = vld [vmem:[%s874_s1 + $0xf0] sm:$0xff]  ;;  %564 = vmatprep.subr.mxu1 %v586_v3  ;;  %v73_v5 = vunpack.c.l.s4 %v587_v4  ;;  %572 = vmatprep.mubr.msk.f32.mxu1 %vm588_vm0, %v586_v3  ;;  %v56_v8 = vld [vmem:[%s874_s1 + $0xe8] sm:$0xff]  ;;  %vm89_vm1 = vcmask 261120   ;;  %vm232_vm2 = vcmask 517120   ;;  %vm345_vm4 = vcmask 523264  }
   0x2   :  { %v42_v1 = vld [vmem:[%s874_s1 + $0x78] sm:$0xff]  ;;  %524 = vmatprep.subr.mxu0 %v58_v0  ;;  %v41_v7 = vld [vmem:[%s874_s1 + $0x70] sm:$0xff]  ;;  %v40_v9 = vld [vmem:[%s874_s1 + $0x68] sm:$0xff]  ;;  %v653_v12 = vshrl.u32 %v75_v6, 7 }
   0x3   :  { %525 = vmatpush3.msra.mxu0 %v42_v1  ;;  %v55_v10 = vld [vmem:[%s874_s1 + $0xe0] sm:$0xff]  ;;  %v74_v11 = vunpack.c.0.s8 %v73_v5  ;;  %v54_v14 = vld [vmem:[%s874_s1 + $0xd8] sm:$0xff]  ;;  %v53_v16 = vld [vmem:[%s874_s1 + $0xd0] sm:$0xff] }
   0x4   :  { %526 = vmatprep.subr.mxu0 %v57_v2  ;;  %v39_v13 = vld [vmem:[%s874_s1 + $0x60] sm:$0xff]  ;;  %v38_v15 = vld [vmem:[%s874_s1 + $0x58] sm:$0xff]  ;;  %v37_v18 = vld [vmem:[%s874_s1 + $0x50] sm:$0xff] }
   0x5   :  { %527 = vmatpush3.msra.mxu0 %v41_v7  ;;  %v668_v17 = vsub.s32 %v74_v11, %v653_v12  ;;  %v52_v19 = vld [vmem:[%s874_s1 + $0xc8] sm:$0xff]  ;;  %v62_v20 = vld [vmem:[%s874_s1 + $0x118] sm:$0xff]  ;;  %v26_v22 = vld [vmem:[%s875_s0] sm:$0x3f] }
   0x6   :  { %528 = vmatprep.subr.mxu0 %v56_v8  ;;  %v36_v21 = vld [vmem:[%s874_s1 + $0x48] sm:$0xff]  ;;  %565 = vmatpush3.msra.mxu1 %v62_v20  ;;  %v61_v23 = vld [vmem:[%s874_s1 + $0x110] sm:$0xff]  ;;  %v51_v24 = vld [vmem:[%s874_s1 + $0xc0] sm:$0xff]  ;;  %v71_v25 = vcombine.high %v26_v22, %v26_v22 }
   0x7   :  { %529 = vmatpush3.msra.mxu0 %v40_v9  ;;  %566 = vmatprep.subr.mxu1 %v586_v3  ;;  %v78_v26 = vrot.slane %v26_v22, %v668_v17  ;;  %v60_v27 = vld [vmem:[%s874_s1 + $0x108] sm:$0xff]  ;;  %v35_v28 = vld [vmem:[%s874_s1 + $0x40] sm:$0xff]  ;;  %v50_v29 = vld [vmem:[%s874_s1 + $0xb8] sm:$0xff] }
   0x8   :  { %530 = vmatprep.subr.mxu0 %v55_v10  ;;  %567 = vmatpush3.msra.mxu1 %v61_v23  ;;  %v34_v31 = vld [vmem:[%s874_s1 + $0x38] sm:$0xff]  ;;  %v85_v32 = vrot.slane %v71_v25, %v668_v17  ;;  %v59_v33 = vld [vmem:[%s874_s1 + $0x100] sm:$0xff]  ;;  %v49_v34 = vld [vmem:[%s874_s1 + $0xb0] sm:$0xff] }
   0x9   :  { %531 = vmatpush3.msra.mxu0 %v39_v13  ;;  %v86_v30 = vcombine.high %v78_v26, %v78_v26  ;;  %568 = vmatprep.subr.mxu1 %v586_v3  ;;  %v33_v35 = vld [vmem:[%s874_s1 + $0x30] sm:$0xff]  ;;  %v48_v36 = vld [vmem:[%s874_s1 + $0xa8] sm:$0xff]  ;;  %v47_v38 = vld [vmem:[%s874_s1 + $0xa0] sm:$0xff] }
   0xa   :  { %532 = vmatprep.subr.mxu0 %v54_v14  ;;  %569 = vmatpush3.msra.mxu1 %v60_v27  ;;  %v32_v37 = vld [vmem:[%s874_s1 + $0x28] sm:$0xff]  ;;  %v31_v39 = vld [vmem:[%s874_s1 + $0x20] sm:$0xff]  ;;  %v46_v40 = vld [vmem:[%s874_s1 + $0x98] sm:$0xff] }
   0xb   :  { %533 = vmatpush3.msra.mxu0 %v38_v15  ;;  %156 = vmatprep.mubr.f32.mxu0 %v86_v30  ;;  %v30_v41 = vld [vmem:[%s874_s1 + $0x18] sm:$0xff]  ;;  %v45_v42 = vld [vmem:[%s874_s1 + $0x90] sm:$0xff]  ;;  %v44_v44 = vld [vmem:[%s874_s1 + $0x88] sm:$0xff] }
   0xc   :  { %534 = vmatprep.subr.mxu0 %v53_v16  ;;  %570 = vmatprep.subr.mxu1 %v586_v3  ;;  %v29_v43 = vld [vmem:[%s874_s1 + $0x10] sm:$0xff]  ;;  %v28_v45 = vld [vmem:[%s874_s1 + $0x8] sm:$0xff]  ;;  %v43_v46 = vld [vmem:[%s874_s1 + $0x80] sm:$0xff] }
   0xd   :  { %535 = vmatpush3.msra.mxu0 %v37_v18  ;;  %571 = vmatpush3.msra.mxu1 %v59_v33  ;;  %v27_v47 = vld [vmem:[%s874_s1] sm:$0xff]  ;;  %v320_v59 = vld [vmem:[%s877_s5 + $0xe8] sm:$0xff]  ;;  %v322_v13 = vld [vmem:[%s877_s5 + $0xf8] sm:$0xff] }
   0xe   :  { %536 = vmatprep.subr.mxu0 %v52_v19  ;;  %573 = vmatmul.mubr.msk.f32.vlgmr.msra.gmra.mxu1 %vm89_vm1, %v85_v32  ;;  %v518_v52 = vld [vmem:[%s876_s2] ss:$0 sm:$0xff]  ;;  %v316_v61 = vld [vmem:[%s877_s5 + $0xc8] sm:$0xff] }
   0xf   :  { %537 = vmatpush3.msra.mxu0 %v36_v21  ;;  %413 = vmatprep.mubr.f32.mxu1 %v586_v3  ;;  %v319_v60 = vld [vmem:[%s877_s5 + $0xe0] sm:$0xff]  ;;  %v312_v63 = vld [vmem:[%s877_s5 + $0xa8] sm:$0xff] }
  0x10   :  { %538 = vmatprep.subr.mxu0 %v51_v24  ;;  %365 = vmatprep.subr.mxu1 %v320_v59  ;;  %v315_v62 = vld [vmem:[%s877_s5 + $0xc0] sm:$0xff]  ;;  %v308_v1 = vld [vmem:[%s877_s5 + $0x88] sm:$0xff]  ;;  %v314_v59 = vld [vmem:[%s877_s5 + $0xb8] sm:$0xff] }
  0x11   :  { %539 = vmatpush3.msra.mxu0 %v35_v28  ;;  %366 = vmatpush1.msra.mxu1 %v319_v60  ;;  %v311_v0 = vld [vmem:[%s877_s5 + $0xa0] sm:$0xff]  ;;  %v304_v4 = vld [vmem:[%s877_s5 + $0x68] sm:$0xff]  ;;  %v313_v60 = vld [vmem:[%s877_s5 + $0xb0] sm:$0xff] }
  0x12   :  { %540 = vmatprep.subr.mxu0 %v50_v29  ;;  %367 = vmatprep.subr.mxu1 %v316_v61  ;;  %v307_v2 = vld [vmem:[%s877_s5 + $0x80] sm:$0xff]  ;;  %v300_v6 = vld [vmem:[%s877_s5 + $0x48] sm:$0xff]  ;;  %v310_v61 = vld [vmem:[%s877_s5 + $0x98] sm:$0xff] }
  0x13   :  { %541 = vmatpush3.msra.mxu0 %v34_v31  ;;  %368 = vmatpush1.msra.mxu1 %v315_v62  ;;  %v303_v5 = vld [vmem:[%s877_s5 + $0x60] sm:$0xff]  ;;  %v296_v8 = vld [vmem:[%s877_s5 + $0x28] sm:$0xff]  ;;  %v309_v62 = vld [vmem:[%s877_s5 + $0x90] sm:$0xff] }
  0x14   :  { %542 = vmatprep.subr.mxu0 %v49_v34  ;;  %369 = vmatprep.subr.mxu1 %v312_v63  ;;  %v299_v7 = vld [vmem:[%s877_s5 + $0x40] sm:$0xff]  ;;  %v292_v10 = vld [vmem:[%s877_s5 + $0x8] sm:$0xff]  ;;  %v305_v63 = vld [vmem:[%s877_s5 + $0x70] sm:$0xff] }
  0x15   :  { %543 = vmatpush3.msra.mxu0 %v33_v35  ;;  %370 = vmatpush1.msra.mxu1 %v311_v0  ;;  %v295_v9 = vld [vmem:[%s877_s5 + $0x20] sm:$0xff]  ;;  %v302_v0 = vld [vmem:[%s877_s5 + $0x58] sm:$0xff] }
  0x16   :  { %544 = vmatprep.subr.mxu0 %v48_v36  ;;  %371 = vmatprep.subr.mxu1 %v308_v1  ;;  %v291_v11 = vld [vmem:[%s877_s5] sm:$0xff]  ;;  %v301_v1 = vld [vmem:[%s877_s5 + $0x50] sm:$0xff] }
  0x17   :  { %545 = vmatpush3.msra.mxu0 %v32_v37  ;;  %372 = vmatpush1.msra.mxu1 %v307_v2  ;;  %v520_v25 = vld [vmem:[%s878_s3] ss:$0 sm:$0xff]  ;;  %v298_v2 = vld [vmem:[%s877_s5 + $0x38] sm:$0xff] }
  0x18   :  { %546 = vmatprep.subr.mxu0 %v47_v38  ;;  %373 = vmatprep.subr.mxu1 %v304_v4  ;;  %v521_v27 = vld [vmem:[%s879_s4] ss:$0 sm:$0xff]  ;;  %v297_v4 = vld [vmem:[%s877_s5 + $0x30] sm:$0xff] }
  0x19   :  { %547 = vmatpush3.msra.mxu0 %v31_v39  ;;  %374 = vmatpush1.msra.mxu1 %v303_v5  ;;  %v294_v5 = vld [vmem:[%s877_s5 + $0x18] sm:$0xff] }
  0x1a   :  { %548 = vmatprep.subr.mxu0 %v46_v40  ;;  %375 = vmatprep.subr.mxu1 %v300_v6  ;;  %v293_v6 = vld [vmem:[%s877_s5 + $0x10] sm:$0xff] }
  0x1b   :  { %549 = vmatpush3.msra.mxu0 %v30_v41  ;;  %376 = vmatpush1.msra.mxu1 %v299_v7  ;;  %v331_v7 = vsub.s32 1, %v653_v12 }
  0x1c   :  { %550 = vmatprep.subr.mxu0 %v45_v42  ;;  %377 = vmatprep.subr.mxu1 %v296_v8 }
  0x1d   :  { %551 = vmatpush3.msra.mxu0 %v29_v43  ;;  %378 = vmatpush1.msra.mxu1 %v295_v9  ;;  %v327_v9 = vsub.s32 0, %v653_v12 }
  0x1e   :  { %552 = vmatprep.subr.mxu0 %v44_v44  ;;  %379 = vmatprep.subr.mxu1 %v292_v10  ;;  %v323_v10 = vld [vmem:[%s880_s6] sm:$0xf] }
  0x1f   :  { %553 = vmatpush3.msra.mxu0 %v28_v45  ;;  %380 = vmatpush1.msra.mxu1 %v291_v11  ;;  %v332_v11 = vrot.slane %v323_v10, %v331_v7 }
  0x20   :  { %554 = vmatprep.subr.mxu0 %v43_v46  ;;  %436 = vmatprep.subr.mxu1 %v322_v13  ;;  %v335_v13 = vsub.s32 2, %v653_v12 }
  0x21   :  { %555 = vmatpush3.msra.mxu0 %v27_v47 }
  0x22   :  { %157 = vmatmul.mubr.f32.vlgmr.msra.gmra.mxu0 %v78_v26 }
  0xce   :  { %v228_v48 = vpop.f32.mrf.mxu1 }
  0xd0   :  { %v574_v49 = vpop.f32.mrf.mxu1 }
  0xe2   :  { %v556_v50 = vpop.f32.mrf.mxu0 }
  0xe4   :  { %v557_v51 = vpop.f32.mrf.mxu0 }
  0xe5   :  { %v558_v53 = vadd.f32 %v557_v51, %v556_v50  ;;  %v589_v50 = vmov -1.0  }
  0xe7   :  { %v159_v54 = vadd.f32 %v558_v53, %v518_v52 }
  0xe9   :  { %v229_v55 = vadd.f32 %v228_v48, %v159_v54 }
  0xeb   :  { %v233_v56 = vsel %vm232_vm2, %v229_v55, 0.0  ;;  %v237_v57 = vmul.f32 %v229_v55, %v229_v55 }
  0xec   :  { %234 = vadd.xlane.f32.xlu0 %v233_v56  ;;  %v321_v56 = vld [vmem:[%s877_s5 + $0xf0] sm:$0xff] }
  0xed   :  { %v238_v58 = vsel %vm232_vm2, %v237_v57, 0.0  ;;  %v318_v57 = vld [vmem:[%s877_s5 + $0xd8] sm:$0xff] }
  0xf0   :  { %239 = vadd.xlane.f32.xlu0 %v238_v58  ;;  %v317_v58 = vld [vmem:[%s877_s5 + $0xd0] sm:$0xff] }
 0x175   :  { %v235_v14 = vpop.xlane.xlu0 %234 }
 0x176   :  { %v236_v15 = vmul.f32 0.015625, %v235_v14  ;;  %v339_v14 = vsub.s32 3, %v653_v12 }
 0x178   :  { %v242_v18 = vmul.f32 %v236_v15, %v236_v15  ;;  %v245_v23 = vsub.f32 %v229_v55, %v236_v15 }
 0x179   :  { %v240_v16 = vpop.xlane.xlu0 %239 }
 0x17a   :  { %v241_v19 = vmul.f32 0.015625, %v240_v16  ;;  %v328_v16 = vrot.slane %v323_v10, %v327_v9 }
 0x17c   :  { %v243_v20 = vsub.f32 %v241_v19, %v242_v18  ;;  %v336_v19 = vrot.slane %v323_v10, %v335_v13 }
 0x17e   :  { %v244_v21 = vmax.f32 %v243_v20, 0.0  ;;  %v340_v20 = vrot.slane %v323_v10, %v339_v14 }
 0x180   :  { %v246_v22 = vadd.f32 1e-06, %v244_v21 }
 0x182   :  { %580 = vrsqrt.f32 %v246_v22 }
 0x18f   :  { %v581_v24 = vpop.eup %580 }
 0x190   :  { %v248_v26 = vmul.f32 %v581_v24, %v245_v23 }
 0x192   :  { %v256_v28 = vmul.f32 %v520_v25, %v248_v26 }
 0x194   :  { %v264_v29 = vadd.f32 %v521_v27, %v256_v28 }
 0x196   :  { %v266_v30 = vmul.f32 0.70710677, %v264_v29  ;;  %v265_v53 = vmul.f32 0.5, %v264_v29 }
 0x198   :  { %v269_v31 = vand.u32 2147483647, %v266_v30  ;;  %vm267_vm3 = vcmp.ge.f32.partialorder %v266_v30, 0.0 }
 0x199   :  { %v268_v51 = vsel %vm267_vm3, 1.0, %v589_v50 }
 0x19a   :  { %v270_v32 = vmul.f32 0.3275911, %v269_v31  ;;  %v282_v34 = vsub.f32 0.0, %v269_v31 }
 0x19c   :  { %v271_v33 = vadd.f32 1.0, %v270_v32  ;;  %v283_v35 = vmul.f32 %v282_v34, %v269_v31 }
 0x19e   :  { %582 = vrcp.f32 %v271_v33  ;;  %v284_v38 = vmul.f32 1.442695, %v283_v35 }
 0x1a0   :  { %584 = vpow2.f32 %v284_v38 }
 0x1ab   :  { %v583_v36 = vpop.eup %582 }
 0x1ac   :  { %v273_v37 = vmul.f32 1.0614054, %v583_v36 }
 0x1ad   :  { %v585_v47 = vpop.eup %584 }
 0x1ae   :  { %v274_v39 = vadd.f32 -1.4531521, %v273_v37 }
 0x1b0   :  { %v275_v40 = vmul.f32 %v583_v36, %v274_v39 }
 0x1b2   :  { %v276_v41 = vadd.f32 1.4214138, %v275_v40 }
 0x1b4   :  { %v277_v42 = vmul.f32 %v583_v36, %v276_v41 }
 0x1b6   :  { %v278_v43 = vadd.f32 -0.28449672, %v277_v42 }
 0x1b8   :  { %v279_v44 = vmul.f32 %v583_v36, %v278_v43 }
 0x1ba   :  { %v280_v45 = vadd.f32 0.2548296, %v279_v44 }
 0x1bc   :  { %v281_v46 = vmul.f32 %v583_v36, %v280_v45 }
 0x1be   :  { %v286_v48 = vmul.f32 %v585_v47, %v281_v46 }
 0x1c0   :  { %v287_v49 = vsub.f32 1.0, %v286_v48 }
 0x1c2   :  { %v288_v52 = vmul.f32 %v287_v49, %v268_v51 }
 0x1c4   :  { %v289_v54 = vadd.f32 1.0, %v288_v52 }
 0x1c6   :  { %v290_v55 = vmul.f32 %v289_v54, %v265_v53 }
 0x1c8   :  { %522 = vmatmul.mubr.msk.f32.vlgmr.msra.gmra.mxu1 %vm345_vm4, %v290_v55 }
 0x1c9   :  { %437 = vmatpush1.msra.mxu1 %v321_v56  ;;  %484 = vmatprep.mubr.f32.mxu1 %v586_v3  ;;  %v306_v3 = vld [vmem:[%s877_s5 + $0x78] sm:$0xff] }
 0x1ca   :  { %438 = vmatprep.subr.mxu1 %v318_v57 }
 0x1cb   :  { %439 = vmatpush1.msra.mxu1 %v317_v58 }
 0x1cc   :  { %440 = vmatprep.subr.mxu1 %v314_v59 }
 0x1cd   :  { %441 = vmatpush1.msra.mxu1 %v313_v60 }
 0x1ce   :  { %442 = vmatprep.subr.mxu1 %v310_v61 }
 0x1cf   :  { %443 = vmatpush1.msra.mxu1 %v309_v62 }
 0x1d0   :  { %444 = vmatprep.subr.mxu1 %v306_v3 }
 0x1d1   :  { %445 = vmatpush1.msra.mxu1 %v305_v63 }
 0x1d2   :  { %446 = vmatprep.subr.mxu1 %v302_v0 }
 0x1d3   :  { %447 = vmatpush1.msra.mxu1 %v301_v1 }
 0x1d4   :  { %448 = vmatprep.subr.mxu1 %v298_v2 }
 0x1d5   :  { %449 = vmatpush1.msra.mxu1 %v297_v4 }
 0x1d6   :  { %450 = vmatprep.subr.mxu1 %v294_v5 }
 0x1d7   :  { %451 = vmatpush1.msra.mxu1 %v293_v6 }
 0x1d8   :  { %523 = vmatmul.mubr.msk.f32.vlgmr.msra.gmra.mxu1 %vm345_vm4, %v290_v55 }
 0x288   :  { %v415_v8 = vpop.f32.mrf.mxu1 }
 0x289   :  { %v416_v22 = vadd.f32 %v415_v8, %v328_v16 }
 0x28a   :  { %v417_v15 = vpop.f32.mrf.mxu1 }
 0x28b   :  { %v418_v18 = vadd.f32 %v417_v15, %v332_v11 }
 0x28d   :  { %v495_v24 = vcombine.low %v416_v22, %v418_v18 }
 0x28f   :  { %v503_v28 = vrot.slane %v495_v24, %v668_v17 }
 0x298   :  { %v486_v21 = vpop.f32.mrf.mxu1 }
 0x299   :  { %v487_v25 = vadd.f32 %v486_v21, %v336_v19 }
 0x29a   :  { %v488_v23 = vpop.f32.mrf.mxu1 }
 0x29b   :  { %v489_v26 = vadd.f32 %v488_v23, %v340_v20 }
 0x29d   :  { %v496_v27 = vcombine.low %v487_v25, %v489_v26 }
 0x29f   :  { %v510_v29 = vrot.slane %v496_v27, %v668_v17 }
 0x2a1   :  { %v511_v30 = vcombine.low %v503_v28, %v510_v29 }
 0x2a3   :  { %513 = vst [vmem:[%s881_s7] sm:$0xff] %v511_v30 }

</bundles_post_ra>
